<compile_context>
chip_gen: v6e
topology: v6e:2x2x1
jax: 0.10.0
libtpu: 0.0.40
codegen_flags: <defaults>
</compile_context>

<pallas_src>
import functools

import jax
import jax.numpy as jnp
import numpy as np
from jax.experimental import pallas as pl
from jax.experimental.pallas import tpu as pltpu

EPS = 1e-5


# --------------------------------------------------------------------------
# Kernels
# --------------------------------------------------------------------------
def _conv3x3_stats_kernel(x_ref, w_ref, m_ref, scale_ref, shift_ref,
                          c_ref, sum_ref, sumsq_ref, *, offsets, pre_act):
    """One batch block per grid step: (optional bn+relu) -> 3x3 conv -> stats.

    x_ref               : (C, L)     activations, channel-major, L = bn*H*W
    w_ref               : (9, C, C)  per-tap conv weights (bf16), tap = ky*3+kx
    m_ref               : (9, 1, L)  border masks (implement padding=1)
    scale_ref/shift_ref : (C, 1)     per-channel affine applied before the conv
    c_ref               : (C, L)     conv output (bf16)
    sum_ref/sumsq_ref   : (C, 1)     per-step per-channel partial statistics
    """
    act = x_ref[...].astype(jnp.float32)                      # (C, L)
    if pre_act:                                               # bn1 + relu (pass 2)
        act = jnp.maximum(act * scale_ref[...] + shift_ref[...], 0.0)

    masks = m_ref[...]                                        # (9, 1, L)
    lanes = act.shape[1]

    # 9 accumulating dots: no im2col buffer, rolls (XLU) feed the MXU directly.
    acc = None
    for t, off in enumerate(offsets):
        if off == 0:
            tap = act                                         # center: mask all-ones
        else:
            tap = pltpu.roll(act, shift=(-off) % lanes, axis=1) * masks[t]
        part = jnp.dot(w_ref[t], tap.astype(jnp.bfloat16),
                       preferred_element_type=jnp.float32)    # (C, L) f32 on MXU
        acc = part if acc is None else acc + part

    c_ref[...] = acc.astype(c_ref.dtype)                      # bf16 activation out

    # Per-step batch-norm partial statistics (reduced across steps in JAX).
    sum_ref[...] = jnp.sum(acc, axis=1, keepdims=True)
    sumsq_ref[...] = jnp.sum(acc * acc, axis=1, keepdims=True)


def _bn_add_relu_kernel(c_ref, x_ref, scale_ref, shift_ref, o_ref):
    """bn2 (precomputed scale/shift) + residual add + relu, one block/step."""
    y = (c_ref[...].astype(jnp.float32) * scale_ref[...] + shift_ref[...]
         + x_ref[...])
    o_ref[...] = jnp.maximum(y, 0.0).astype(o_ref.dtype)


# --------------------------------------------------------------------------
# pallas_call wrappers
# --------------------------------------------------------------------------
def _full_spec(shape):
    return pl.BlockSpec(shape, lambda i, _n=len(shape): (0,) * _n)


def _conv3x3_stats(x, w_taps, masks, scale, shift, *, offsets, pre_act):
    NB, C, L = x.shape
    per_nb = pl.BlockSpec((None, C, L), lambda i: (i, 0, 0))
    per_nb_stat = pl.BlockSpec((None, C, 1), lambda i: (i, 0, 0))
    flops = 2 * NB * C * (9 * C) * L
    bytes_accessed = (x.dtype.itemsize * NB * C * L       # activation in
                      + 2 * NB * C * L                    # bf16 activation out
                      + 2 * 9 * C * C + 4 * 9 * L + 4 * 4 * C)
    return pl.pallas_call(
        functools.partial(_conv3x3_stats_kernel, offsets=offsets, pre_act=pre_act),
        grid=(NB,),
        in_specs=[per_nb,                     # activations, one batch block per step
                  _full_spec((9, C, C)),      # per-tap bf16 weights (resident)
                  _full_spec((9, 1, L)),      # border masks (resident)
                  _full_spec((C, 1)),         # pre-conv scale
                  _full_spec((C, 1))],        # pre-conv shift
        out_specs=[per_nb, per_nb_stat, per_nb_stat],
        out_shape=[jax.ShapeDtypeStruct((NB, C, L), jnp.bfloat16),
                   jax.ShapeDtypeStruct((NB, C, 1), jnp.float32),
                   jax.ShapeDtypeStruct((NB, C, 1), jnp.float32)],
        compiler_params=pltpu.CompilerParams(
            dimension_semantics=("parallel",)),   # per-step stats -> fully parallel
        cost_estimate=pl.CostEstimate(flops=flops, transcendentals=0,
                                      bytes_accessed=bytes_accessed),
    )(x, w_taps, masks, scale, shift)


def _bn_add_relu(c2, x, scale, shift):
    NB, C, L = c2.shape
    per_nb = pl.BlockSpec((None, C, L), lambda i: (i, 0, 0))
    return pl.pallas_call(
        _bn_add_relu_kernel,
        grid=(NB,),
        in_specs=[per_nb, per_nb, _full_spec((C, 1)), _full_spec((C, 1))],
        out_specs=per_nb,
        out_shape=jax.ShapeDtypeStruct((NB, C, L), jnp.float32),
        input_output_aliases={1: 0},          # residual x buffer reused as output
        compiler_params=pltpu.CompilerParams(
            dimension_semantics=("parallel",)),
        cost_estimate=pl.CostEstimate(flops=4 * NB * C * L, transcendentals=0,
                                      bytes_accessed=(2 + 4 + 4) * NB * C * L),
    )(c2, x, scale, shift)


# --------------------------------------------------------------------------
# Host-side packing helpers + full block
# --------------------------------------------------------------------------
def _make_masks(H, W, bn):
    yy = jnp.arange(H, dtype=jnp.int32).reshape(H, 1)
    xx = jnp.arange(W, dtype=jnp.int32).reshape(1, W)
    rows = []
    for dy in range(3):
        for dx in range(3):
            ok = ((yy + dy - 1 >= 0) & (yy + dy - 1 < H) &
                  (xx + dx - 1 >= 0) & (xx + dx - 1 < W))
            rows.append(jnp.tile(ok.reshape(1, 1, H * W), (1, 1, bn)))
    return jnp.concatenate(rows, axis=0).astype(jnp.float32)       # (9, 1, bn*HW)


def _pack_weights_taps(w, c_pad):
    # OIHW -> (9, c_pad, c_pad) bf16; tap index = ky*3 + kx.
    cout, cin = w.shape[0], w.shape[1]
    w_t = jnp.transpose(w.astype(jnp.float32), (2, 3, 0, 1))       # (3, 3, O, I)
    w_t = jnp.pad(w_t, ((0, 0), (0, 0), (0, c_pad - cout), (0, c_pad - cin)))
    return w_t.reshape(9, c_pad, c_pad).astype(jnp.bfloat16)


def _bn_scale_shift(s, ss, gamma, beta, count):
    mean = s / count
    var = jnp.maximum(ss / count - mean * mean, 0.0)   # biased (train-mode) var
    scale = gamma * jax.lax.rsqrt(var + EPS)
    return scale, beta - mean * scale


def _choose_batch_block(N, HW, c_pad):
    # Stack several samples on the lane axis at small shapes so each grid step
    # presents a >=512-lane matmul/store; keep the block well under VMEM.
    bn = 1
    for d in range(1, N + 1):
        if N % d:
            continue
        if d * HW * c_pad * 4 > 2 * 1024 * 1024:
            break
        bn = d
        if d * HW >= 512:
            break
    return bn


@jax.jit
def basic_block_pallas(x_nchw, w1, g1, b1, w2, g2, b2):
    """x_nchw: (N, C, H, W) like PyTorch; weights in OIHW. Returns NCHW f32."""
    N, C, H, W = x_nchw.shape
    assert w1.shape[0] == C, "stride=1, downsample=None => inplanes == planes"
    HW = H * W
    c_pad = -(-C // 8) * 8                     # sublane-align channels
    count = float(N * HW)

    bn = _choose_batch_block(N, HW, c_pad)     # samples stacked per grid step
    nb = N // bn
    L = bn * HW

    x = x_nchw.reshape(N, C, HW).astype(jnp.float32)
    x = jnp.pad(x, ((0, 0), (0, c_pad - C), (0, 0)))   # no-op when C % 8 == 0
    if bn > 1:
        # Stack bn samples on the lane axis (sample-major): (nb, c_pad, bn*HW).
        x = x.reshape(nb, bn, c_pad, HW).transpose(0, 2, 1, 3).reshape(nb, c_pad, L)
    else:
        x = x.reshape(nb, c_pad, L)

    w1k = _pack_weights_taps(w1, c_pad)
    w2k = _pack_weights_taps(w2, c_pad)
    pad1 = jnp.ones((c_pad - C,), jnp.float32)
    pad0 = jnp.zeros((c_pad - C,), jnp.float32)
    g1p = jnp.concatenate([g1.astype(jnp.float32), pad1]).reshape(c_pad, 1)
    b1p = jnp.concatenate([b1.astype(jnp.float32), pad0]).reshape(c_pad, 1)
    g2p = jnp.concatenate([g2.astype(jnp.float32), pad1]).reshape(c_pad, 1)
    b2p = jnp.concatenate([b2.astype(jnp.float32), pad0]).reshape(c_pad, 1)

    masks = _make_masks(H, W, bn)
    offsets = tuple((dy - 1) * W + (dx - 1) for dy in range(3) for dx in range(3))

    ones = jnp.ones((c_pad, 1), jnp.float32)
    zeros = jnp.zeros((c_pad, 1), jnp.float32)

    # pass 1: conv1 (+ per-step bn1 partial statistics)
    c1, s1, ss1 = _conv3x3_stats(x, w1k, masks, ones, zeros,
                                 offsets=offsets, pre_act=False)
    scale1, shift1 = _bn_scale_shift(jnp.sum(s1, axis=0), jnp.sum(ss1, axis=0),
                                     g1p, b1p, count)

    # pass 2: bn1 + relu fused into conv2 (+ per-step bn2 partial statistics)
    c2, s2, ss2 = _conv3x3_stats(c1, w2k, masks, scale1, shift1,
                                 offsets=offsets, pre_act=True)
    scale2, shift2 = _bn_scale_shift(jnp.sum(s2, axis=0), jnp.sum(ss2, axis=0),
                                     g2p, b2p, count)

    # pass 3: bn2 + residual add + relu (output aliases the residual buffer)
    out = _bn_add_relu(c2, x, scale2, shift2)

    if bn > 1:
        out = out.reshape(nb, c_pad, bn, HW).transpose(0, 2, 1, 3)
    out = out.reshape(N, c_pad, HW)
    return out[:, :C, :].reshape(N, C, H, W)


# --------------------------------------------------------------------------
# Pure-JAX reference (training-mode BN), NCHW, f32 HIGHEST precision
# --------------------------------------------------------------------------
def basic_block_ref(x, w1, g1, b1, w2, g2, b2):
    def conv(a, w):
        return jax.lax.conv_general_dilated(
            a, w, window_strides=(1, 1), padding="SAME",
            dimension_numbers=("NCHW", "OIHW", "NCHW"),
            precision=jax.lax.Precision.HIGHEST)

    def bn(a, g, b):
        mean = a.mean(axis=(0, 2, 3), keepdims=True)
        var = ((a - mean) ** 2).mean(axis=(0, 2, 3), keepdims=True)
        return ((a - mean) / jnp.sqrt(var + EPS) * g.reshape(1, -1, 1, 1)
                + b.reshape(1, -1, 1, 1))

    y = jnp.maximum(bn(conv(x, w1), g1, b1), 0.0)
    z = bn(conv(y, w2), g2, b2)
    return jnp.maximum(z + x, 0.0)


if __name__ == "__main__":
    N, C, H, W = 2, 4, 16, 16  # inplanes == planes == 4, stride=1, downsample=None
    key = jax.random.PRNGKey(0)
    kx, k1, k2, kg1, kb1, kg2, kb2 = jax.random.split(key, 7)

    x = jax.random.normal(kx, (N, C, H, W), jnp.float32)
    w1 = jax.random.normal(k1, (C, C, 3, 3), jnp.float32) * 0.1
    w2 = jax.random.normal(k2, (C, C, 3, 3), jnp.float32) * 0.1
    g1 = 1.0 + 0.1 * jax.random.normal(kg1, (C,), jnp.float32)
    b1 = 0.1 * jax.random.normal(kb1, (C,), jnp.float32)
    g2 = 1.0 + 0.1 * jax.random.normal(kg2, (C,), jnp.float32)
    b2 = 0.1 * jax.random.normal(kb2, (C,), jnp.float32)

    out = jax.block_until_ready(basic_block_pallas(x, w1, g1, b1, w2, g2, b2))
    ref = jax.block_until_ready(basic_block_ref(x, w1, g1, b1, w2, g2, b2))
    # bf16 MXU matmuls + bf16 intermediate activations vs. an f32 HIGHEST-
    # precision reference: expect ~0.5% relative error, so 2e-2 tolerances.
    np.testing.assert_allclose(np.asarray(out), np.asarray(ref), rtol=2e-2, atol=2e-2)

    print("KERNEL_OK")
</pallas_src>

<mosaic_0001>
module attributes {stable_mosaic.version = 11 : i64} {
  func.func @_bn_add_relu_kernel(%arg0: i32, %arg1: memref<1x8x512xbf16, #tpu.memory_space<vmem>>, %arg2: memref<1x8x512xf32, #tpu.memory_space<vmem>>, %arg3: memref<8x1xf32, #tpu.memory_space<vmem>>, %arg4: memref<8x1xf32, #tpu.memory_space<vmem>>, %arg5: memref<1x8x512xf32, #tpu.memory_space<vmem>>) attributes {dimension_semantics = [#tpu.dimension_semantics<parallel>], iteration_bounds = array<i64: 1>, scalar_prefetch = 0 : i64, scratch_operands = 0 : i64, tpu.core_type = #tpu.core_type<tc>, window_params = [{transform_indices = @transform_0, window_bounds = array<i64: 1, 8, 512>}, {transform_indices = @transform_1, window_bounds = array<i64: 1, 8, 512>}, {pipeline_mode = #tpu.pipeline_mode<synchronous>, transform_indices = @transform_2, window_bounds = array<i64: 8, 1>}, {pipeline_mode = #tpu.pipeline_mode<synchronous>, transform_indices = @transform_3, window_bounds = array<i64: 8, 1>}, {transform_indices = @transform_4, window_bounds = array<i64: 1, 8, 512>}]} {
    %c0 = arith.constant 0 : index
    %c0_0 = arith.constant 0 : index
    %c0_1 = arith.constant 0 : index
    %0 = vector.load %arg1[%c0, %c0_0, %c0_1] : memref<1x8x512xbf16, #tpu.memory_space<vmem>>, vector<1x8x512xbf16>
    %1 = vector.shape_cast %0 : vector<1x8x512xbf16> to vector<8x512xbf16>
    %2 = arith.extf %1 : vector<8x512xbf16> to vector<8x512xf32>
    %c0_2 = arith.constant 0 : index
    %c0_3 = arith.constant 0 : index
    %3 = vector.load %arg3[%c0_2, %c0_3] : memref<8x1xf32, #tpu.memory_space<vmem>>, vector<8x1xf32>
    %4 = vector.broadcast %3 : vector<8x1xf32> to vector<8x512xf32>
    %5 = arith.mulf %2, %4 : vector<8x512xf32>
    %c0_4 = arith.constant 0 : index
    %c0_5 = arith.constant 0 : index
    %6 = vector.load %arg4[%c0_4, %c0_5] : memref<8x1xf32, #tpu.memory_space<vmem>>, vector<8x1xf32>
    %7 = vector.broadcast %6 : vector<8x1xf32> to vector<8x512xf32>
    %8 = arith.addf %5, %7 : vector<8x512xf32>
    %c0_6 = arith.constant 0 : index
    %c0_7 = arith.constant 0 : index
    %c0_8 = arith.constant 0 : index
    %9 = vector.load %arg2[%c0_6, %c0_7, %c0_8] : memref<1x8x512xf32, #tpu.memory_space<vmem>>, vector<1x8x512xf32>
    %10 = vector.shape_cast %9 : vector<1x8x512xf32> to vector<8x512xf32>
    %11 = arith.addf %8, %10 : vector<8x512xf32>
    %cst = arith.constant 0.000000e+00 : f32
    %12 = vector.broadcast %cst : f32 to vector<8x512xf32>
    %13 = arith.maximumf %11, %12 : vector<8x512xf32>
    %c0_9 = arith.constant 0 : index
    %c0_10 = arith.constant 0 : index
    %c0_11 = arith.constant 0 : index
    %14 = vector.load %arg5[%c0_9, %c0_10, %c0_11] : memref<1x8x512xf32, #tpu.memory_space<vmem>>, vector<1x8x512xf32>
    %15 = vector.shape_cast %14 : vector<1x8x512xf32> to vector<8x512xf32>
    %16 = vector.shape_cast %13 : vector<8x512xf32> to vector<1x8x512xf32>
    tpu.vector_store %arg5[%c0_9, %c0_10, %c0_11], %16 {strides = array<i32>} : memref<1x8x512xf32, #tpu.memory_space<vmem>>, vector<1x8x512xf32>,
    return
  }
  func.func @transform_0(%arg0: i32) -> (i32, i32, i32) {
    %c0_i32 = arith.constant 0 : i32
    %c0_i32_0 = arith.constant 0 : i32
    %c0_i32_1 = arith.constant 0 : i32
    return %arg0, %c0_i32, %c0_i32_0 : i32, i32, i32
  }
  func.func @transform_1(%arg0: i32) -> (i32, i32, i32) {
    %c0_i32 = arith.constant 0 : i32
    %c0_i32_0 = arith.constant 0 : i32
    %c0_i32_1 = arith.constant 0 : i32
    return %arg0, %c0_i32, %c0_i32_0 : i32, i32, i32
  }
  func.func @transform_2(%arg0: i32) -> (i32, i32) {
    %c0_i32 = arith.constant 0 : i32
    %c0_i32_0 = arith.constant 0 : i32
    %c0_i32_1 = arith.constant 0 : i32
    return %c0_i32, %c0_i32_0 : i32, i32
  }
  func.func @transform_3(%arg0: i32) -> (i32, i32) {
    %c0_i32 = arith.constant 0 : i32
    %c0_i32_0 = arith.constant 0 : i32
    %c0_i32_1 = arith.constant 0 : i32
    return %c0_i32, %c0_i32_0 : i32, i32
  }
  func.func @transform_4(%arg0: i32) -> (i32, i32, i32) {
    %c0_i32 = arith.constant 0 : i32
    %c0_i32_0 = arith.constant 0 : i32
    %c0_i32_1 = arith.constant 0 : i32
    return %arg0, %c0_i32, %c0_i32_0 : i32, i32, i32
  }
}

module attributes {stable_mosaic.version = 11 : i64} {
  func.func @_conv3x3_stats_kernel(%arg0: i32, %arg1: memref<1x8x512xf32, #tpu.memory_space<vmem>>, %arg2: memref<9x8x8xbf16, #tpu.memory_space<vmem>>, %arg3: memref<9x1x512xf32, #tpu.memory_space<vmem>>, %arg4: memref<8x1xf32, #tpu.memory_space<vmem>>, %arg5: memref<8x1xf32, #tpu.memory_space<vmem>>, %arg6: memref<1x8x512xbf16, #tpu.memory_space<vmem>>, %arg7: memref<1x8x1xf32, #tpu.memory_space<vmem>>, %arg8: memref<1x8x1xf32, #tpu.memory_space<vmem>>) attributes {dimension_semantics = [#tpu.dimension_semantics<parallel>], iteration_bounds = array<i64: 1>, scalar_prefetch = 0 : i64, scratch_operands = 0 : i64, tpu.core_type = #tpu.core_type<tc>, window_params = [{transform_indices = @transform_0, window_bounds = array<i64: 1, 8, 512>}, {pipeline_mode = #tpu.pipeline_mode<synchronous>, transform_indices = @transform_1, window_bounds = array<i64: 9, 8, 8>}, {pipeline_mode = #tpu.pipeline_mode<synchronous>, transform_indices = @transform_2, window_bounds = array<i64: 9, 1, 512>}, {pipeline_mode = #tpu.pipeline_mode<synchronous>, transform_indices = @transform_3, window_bounds = array<i64: 8, 1>}, {pipeline_mode = #tpu.pipeline_mode<synchronous>, transform_indices = @transform_4, window_bounds = array<i64: 8, 1>}, {transform_indices = @transform_5, window_bounds = array<i64: 1, 8, 512>}, {transform_indices = @transform_6, window_bounds = array<i64: 1, 8, 1>}, {transform_indices = @transform_7, window_bounds = array<i64: 1, 8, 1>}]} {
    %c0 = arith.constant 0 : index
    %c0_0 = arith.constant 0 : index
    %c0_1 = arith.constant 0 : index
    %0 = vector.load %arg1[%c0, %c0_0, %c0_1] : memref<1x8x512xf32, #tpu.memory_space<vmem>>, vector<1x8x512xf32>
    %1 = vector.shape_cast %0 : vector<1x8x512xf32> to vector<8x512xf32>
    %c0_2 = arith.constant 0 : index
    %c0_3 = arith.constant 0 : index
    %c0_4 = arith.constant 0 : index
    %2 = vector.load %arg3[%c0_2, %c0_3, %c0_4] : memref<9x1x512xf32, #tpu.memory_space<vmem>>, vector<9x1x512xf32>
    %c17_i32 = arith.constant 17 : i32
    %3 = tpu.dynamic_rotate %1 by %c17_i32 dim 1 : vector<8x512xf32>, i32 -> vector<8x512xf32>
    %4 = vector.extract_strided_slice %2 {offsets = [0, 0, 0], sizes = [1, 1, 512], strides = [1, 1, 1]} : vector<9x1x512xf32> to vector<1x1x512xf32>
    %5 = vector.shape_cast %4 : vector<1x1x512xf32> to vector<1x512xf32>
    %6 = vector.broadcast %5 : vector<1x512xf32> to vector<8x512xf32>
    %7 = arith.mulf %3, %6 : vector<8x512xf32>
    %c0_5 = arith.constant 0 : index
    %c0_6 = arith.constant 0 : index
    %c0_7 = arith.constant 0 : index
    %8 = vector.load %arg2[%c0_5, %c0_6, %c0_7] : memref<9x8x8xbf16, #tpu.memory_space<vmem>>, vector<1x8x8xbf16>
    %9 = vector.shape_cast %8 : vector<1x8x8xbf16> to vector<8x8xbf16>
    %10 = arith.truncf %7 : vector<8x512xf32> to vector<8x512xbf16>
    %cst = arith.constant dense<0.000000e+00> : vector<8x512xf32>
    %11 = tpu.matmul %9, %10, %cst {dimension_numbers = #tpu.dot_dimension_numbers<[1], [0], [0], [1], [0, 0, 1, 1], [], []>} : vector<8x8xbf16>, vector<8x512xbf16>, vector<8x512xf32> -> vector<8x512xf32>
    %c16_i32 = arith.constant 16 : i32
    %12 = tpu.dynamic_rotate %1 by %c16_i32 dim 1 : vector<8x512xf32>, i32 -> vector<8x512xf32>
    %13 = vector.extract_strided_slice %2 {offsets = [1, 0, 0], sizes = [1, 1, 512], strides = [1, 1, 1]} : vector<9x1x512xf32> to vector<1x1x512xf32>
    %14 = vector.shape_cast %13 : vector<1x1x512xf32> to vector<1x512xf32>
    %15 = vector.broadcast %14 : vector<1x512xf32> to vector<8x512xf32>
    %16 = arith.mulf %12, %15 : vector<8x512xf32>
    %c1 = arith.constant 1 : index
    %c0_8 = arith.constant 0 : index
    %c0_9 = arith.constant 0 : index
    %17 = vector.load %arg2[%c1, %c0_8, %c0_9] : memref<9x8x8xbf16, #tpu.memory_space<vmem>>, vector<1x8x8xbf16>
    %18 = vector.shape_cast %17 : vector<1x8x8xbf16> to vector<8x8xbf16>
    %19 = arith.truncf %16 : vector<8x512xf32> to vector<8x512xbf16>
    %cst_10 = arith.constant dense<0.000000e+00> : vector<8x512xf32>
    %20 = tpu.matmul %18, %19, %cst_10 {dimension_numbers = #tpu.dot_dimension_numbers<[1], [0], [0], [1], [0, 0, 1, 1], [], []>} : vector<8x8xbf16>, vector<8x512xbf16>, vector<8x512xf32> -> vector<8x512xf32>
    %21 = arith.addf %11, %20 : vector<8x512xf32>
    %c15_i32 = arith.constant 15 : i32
    %22 = tpu.dynamic_rotate %1 by %c15_i32 dim 1 : vector<8x512xf32>, i32 -> vector<8x512xf32>
    %23 = vector.extract_strided_slice %2 {offsets = [2, 0, 0], sizes = [1, 1, 512], strides = [1, 1, 1]} : vector<9x1x512xf32> to vector<1x1x512xf32>
    %24 = vector.shape_cast %23 : vector<1x1x512xf32> to vector<1x512xf32>
    %25 = vector.broadcast %24 : vector<1x512xf32> to vector<8x512xf32>
    %26 = arith.mulf %22, %25 : vector<8x512xf32>
    %c2 = arith.constant 2 : index
    %c0_11 = arith.constant 0 : index
    %c0_12 = arith.constant 0 : index
    %27 = vector.load %arg2[%c2, %c0_11, %c0_12] : memref<9x8x8xbf16, #tpu.memory_space<vmem>>, vector<1x8x8xbf16>
    %28 = vector.shape_cast %27 : vector<1x8x8xbf16> to vector<8x8xbf16>
    %29 = arith.truncf %26 : vector<8x512xf32> to vector<8x512xbf16>
    %cst_13 = arith.constant dense<0.000000e+00> : vector<8x512xf32>
    %30 = tpu.matmul %28, %29, %cst_13 {dimension_numbers = #tpu.dot_dimension_numbers<[1], [0], [0], [1], [0, 0, 1, 1], [], []>} : vector<8x8xbf16>, vector<8x512xbf16>, vector<8x512xf32> -> vector<8x512xf32>
    %31 = arith.addf %21, %30 : vector<8x512xf32>
    %c1_i32 = arith.constant 1 : i32
    %32 = tpu.dynamic_rotate %1 by %c1_i32 dim 1 : vector<8x512xf32>, i32 -> vector<8x512xf32>
    %33 = vector.extract_strided_slice %2 {offsets = [3, 0, 0], sizes = [1, 1, 512], strides = [1, 1, 1]} : vector<9x1x512xf32> to vector<1x1x512xf32>
    %34 = vector.shape_cast %33 : vector<1x1x512xf32> to vector<1x512xf32>
    %35 = vector.broadcast %34 : vector<1x512xf32> to vector<8x512xf32>
    %36 = arith.mulf %32, %35 : vector<8x512xf32>
    %c3 = arith.constant 3 : index
    %c0_14 = arith.constant 0 : index
    %c0_15 = arith.constant 0 : index
    %37 = vector.load %arg2[%c3, %c0_14, %c0_15] : memref<9x8x8xbf16, #tpu.memory_space<vmem>>, vector<1x8x8xbf16>
    %38 = vector.shape_cast %37 : vector<1x8x8xbf16> to vector<8x8xbf16>
    %39 = arith.truncf %36 : vector<8x512xf32> to vector<8x512xbf16>
    %cst_16 = arith.constant dense<0.000000e+00> : vector<8x512xf32>
    %40 = tpu.matmul %38, %39, %cst_16 {dimension_numbers = #tpu.dot_dimension_numbers<[1], [0], [0], [1], [0, 0, 1, 1], [], []>} : vector<8x8xbf16>, vector<8x512xbf16>, vector<8x512xf32> -> vector<8x512xf32>
    %41 = arith.addf %31, %40 : vector<8x512xf32>
    %c4 = arith.constant 4 : index
    %c0_17 = arith.constant 0 : index
    %c0_18 = arith.constant 0 : index
    %42 = vector.load %arg2[%c4, %c0_17, %c0_18] : memref<9x8x8xbf16, #tpu.memory_space<vmem>>, vector<1x8x8xbf16>
    %43 = vector.shape_cast %42 : vector<1x8x8xbf16> to vector<8x8xbf16>
    %44 = arith.truncf %1 : vector<8x512xf32> to vector<8x512xbf16>
    %cst_19 = arith.constant dense<0.000000e+00> : vector<8x512xf32>
    %45 = tpu.matmul %43, %44, %cst_19 {dimension_numbers = #tpu.dot_dimension_numbers<[1], [0], [0], [1], [0, 0, 1, 1], [], []>} : vector<8x8xbf16>, vector<8x512xbf16>, vector<8x512xf32> -> vector<8x512xf32>
    %46 = arith.addf %41, %45 : vector<8x512xf32>
    %c511_i32 = arith.constant 511 : i32
    %47 = tpu.dynamic_rotate %1 by %c511_i32 dim 1 : vector<8x512xf32>, i32 -> vector<8x512xf32>
    %48 = vector.extract_strided_slice %2 {offsets = [5, 0, 0], sizes = [1, 1, 512], strides = [1, 1, 1]} : vector<9x1x512xf32> to vector<1x1x512xf32>
    %49 = vector.shape_cast %48 : vector<1x1x512xf32> to vector<1x512xf32>
    %50 = vector.broadcast %49 : vector<1x512xf32> to vector<8x512xf32>
    %51 = arith.mulf %47, %50 : vector<8x512xf32>
    %c5 = arith.constant 5 : index
    %c0_20 = arith.constant 0 : index
    %c0_21 = arith.constant 0 : index
    %52 = vector.load %arg2[%c5, %c0_20, %c0_21] : memref<9x8x8xbf16, #tpu.memory_space<vmem>>, vector<1x8x8xbf16>
    %53 = vector.shape_cast %52 : vector<1x8x8xbf16> to vector<8x8xbf16>
    %54 = arith.truncf %51 : vector<8x512xf32> to vector<8x512xbf16>
    %cst_22 = arith.constant dense<0.000000e+00> : vector<8x512xf32>
    %55 = tpu.matmul %53, %54, %cst_22 {dimension_numbers = #tpu.dot_dimension_numbers<[1], [0], [0], [1], [0, 0, 1, 1], [], []>} : vector<8x8xbf16>, vector<8x512xbf16>, vector<8x512xf32> -> vector<8x512xf32>
    %56 = arith.addf %46, %55 : vector<8x512xf32>
    %c497_i32 = arith.constant 497 : i32
    %57 = tpu.dynamic_rotate %1 by %c497_i32 dim 1 : vector<8x512xf32>, i32 -> vector<8x512xf32>
    %58 = vector.extract_strided_slice %2 {offsets = [6, 0, 0], sizes = [1, 1, 512], strides = [1, 1, 1]} : vector<9x1x512xf32> to vector<1x1x512xf32>
    %59 = vector.shape_cast %58 : vector<1x1x512xf32> to vector<1x512xf32>
    %60 = vector.broadcast %59 : vector<1x512xf32> to vector<8x512xf32>
    %61 = arith.mulf %57, %60 : vector<8x512xf32>
    %c6 = arith.constant 6 : index
    %c0_23 = arith.constant 0 : index
    %c0_24 = arith.constant 0 : index
    %62 = vector.load %arg2[%c6, %c0_23, %c0_24] : memref<9x8x8xbf16, #tpu.memory_space<vmem>>, vector<1x8x8xbf16>
    %63 = vector.shape_cast %62 : vector<1x8x8xbf16> to vector<8x8xbf16>
    %64 = arith.truncf %61 : vector<8x512xf32> to vector<8x512xbf16>
    %cst_25 = arith.constant dense<0.000000e+00> : vector<8x512xf32>
    %65 = tpu.matmul %63, %64, %cst_25 {dimension_numbers = #tpu.dot_dimension_numbers<[1], [0], [0], [1], [0, 0, 1, 1], [], []>} : vector<8x8xbf16>, vector<8x512xbf16>, vector<8x512xf32> -> vector<8x512xf32>
    %66 = arith.addf %56, %65 : vector<8x512xf32>
    %c496_i32 = arith.constant 496 : i32
    %67 = tpu.dynamic_rotate %1 by %c496_i32 dim 1 : vector<8x512xf32>, i32 -> vector<8x512xf32>
    %68 = vector.extract_strided_slice %2 {offsets = [7, 0, 0], sizes = [1, 1, 512], strides = [1, 1, 1]} : vector<9x1x512xf32> to vector<1x1x512xf32>
    %69 = vector.shape_cast %68 : vector<1x1x512xf32> to vector<1x512xf32>
    %70 = vector.broadcast %69 : vector<1x512xf32> to vector<8x512xf32>
    %71 = arith.mulf %67, %70 : vector<8x512xf32>
    %c7 = arith.constant 7 : index
    %c0_26 = arith.constant 0 : index
    %c0_27 = arith.constant 0 : index
    %72 = vector.load %arg2[%c7, %c0_26, %c0_27] : memref<9x8x8xbf16, #tpu.memory_space<vmem>>, vector<1x8x8xbf16>
    %73 = vector.shape_cast %72 : vector<1x8x8xbf16> to vector<8x8xbf16>
    %74 = arith.truncf %71 : vector<8x512xf32> to vector<8x512xbf16>
    %cst_28 = arith.constant dense<0.000000e+00> : vector<8x512xf32>
    %75 = tpu.matmul %73, %74, %cst_28 {dimension_numbers = #tpu.dot_dimension_numbers<[1], [0], [0], [1], [0, 0, 1, 1], [], []>} : vector<8x8xbf16>, vector<8x512xbf16>, vector<8x512xf32> -> vector<8x512xf32>
    %76 = arith.addf %66, %75 : vector<8x512xf32>
    %c495_i32 = arith.constant 495 : i32
    %77 = tpu.dynamic_rotate %1 by %c495_i32 dim 1 : vector<8x512xf32>, i32 -> vector<8x512xf32>
    %78 = vector.extract_strided_slice %2 {offsets = [8, 0, 0], sizes = [1, 1, 512], strides = [1, 1, 1]} : vector<9x1x512xf32> to vector<1x1x512xf32>
    %79 = vector.shape_cast %78 : vector<1x1x512xf32> to vector<1x512xf32>
    %80 = vector.broadcast %79 : vector<1x512xf32> to vector<8x512xf32>
    %81 = arith.mulf %77, %80 : vector<8x512xf32>
    %c8 = arith.constant 8 : index
    %c0_29 = arith.constant 0 : index
    %c0_30 = arith.constant 0 : index
    %82 = vector.load %arg2[%c8, %c0_29, %c0_30] : memref<9x8x8xbf16, #tpu.memory_space<vmem>>, vector<1x8x8xbf16>
    %83 = vector.shape_cast %82 : vector<1x8x8xbf16> to vector<8x8xbf16>
    %84 = arith.truncf %81 : vector<8x512xf32> to vector<8x512xbf16>
    %cst_31 = arith.constant dense<0.000000e+00> : vector<8x512xf32>
    %85 = tpu.matmul %83, %84, %cst_31 {dimension_numbers = #tpu.dot_dimension_numbers<[1], [0], [0], [1], [0, 0, 1, 1], [], []>} : vector<8x8xbf16>, vector<8x512xbf16>, vector<8x512xf32> -> vector<8x512xf32>
    %86 = arith.addf %76, %85 : vector<8x512xf32>
    %87 = arith.truncf %86 : vector<8x512xf32> to vector<8x512xbf16>
    %c0_32 = arith.constant 0 : index
    %c0_33 = arith.constant 0 : index
    %c0_34 = arith.constant 0 : index
    %88 = vector.load %arg6[%c0_32, %c0_33, %c0_34] : memref<1x8x512xbf16, #tpu.memory_space<vmem>>, vector<1x8x512xbf16>
    %89 = vector.shape_cast %88 : vector<1x8x512xbf16> to vector<8x512xbf16>
    %90 = vector.shape_cast %87 : vector<8x512xbf16> to vector<1x8x512xbf16>
    tpu.vector_store %arg6[%c0_32, %c0_33, %c0_34], %90 {strides = array<i32>} : memref<1x8x512xbf16, #tpu.memory_space<vmem>>, vector<1x8x512xbf16>,
    %cst_35 = arith.constant dense<0.000000e+00> : vector<8xf32>
    %91 = vector.multi_reduction <add>, %86, %cst_35 [1] : vector<8x512xf32> to vector<8xf32>
    %92 = vector.shape_cast %91 : vector<8xf32> to vector<8x1xf32>
    %c0_36 = arith.constant 0 : index
    %c0_37 = arith.constant 0 : index
    %c0_38 = arith.constant 0 : index
    %93 = vector.load %arg7[%c0_36, %c0_37, %c0_38] : memref<1x8x1xf32, #tpu.memory_space<vmem>>, vector<1x8x1xf32>
    %94 = vector.shape_cast %93 : vector<1x8x1xf32> to vector<8x1xf32>
    %95 = vector.shape_cast %92 : vector<8x1xf32> to vector<1x8x1xf32>
    tpu.vector_store %arg7[%c0_36, %c0_37, %c0_38], %95 {strides = array<i32>} : memref<1x8x1xf32, #tpu.memory_space<vmem>>, vector<1x8x1xf32>,
    %96 = arith.mulf %86, %86 : vector<8x512xf32>
    %cst_39 = arith.constant dense<0.000000e+00> : vector<8xf32>
    %97 = vector.multi_reduction <add>, %96, %cst_39 [1] : vector<8x512xf32> to vector<8xf32>
    %98 = vector.shape_cast %97 : vector<8xf32> to vector<8x1xf32>
    %c0_40 = arith.constant 0 : index
    %c0_41 = arith.constant 0 : index
    %c0_42 = arith.constant 0 : index
    %99 = vector.load %arg8[%c0_40, %c0_41, %c0_42] : memref<1x8x1xf32, #tpu.memory_space<vmem>>, vector<1x8x1xf32>
    %100 = vector.shape_cast %99 : vector<1x8x1xf32> to vector<8x1xf32>
    %101 = vector.shape_cast %98 : vector<8x1xf32> to vector<1x8x1xf32>
    tpu.vector_store %arg8[%c0_40, %c0_41, %c0_42], %101 {strides = array<i32>} : memref<1x8x1xf32, #tpu.memory_space<vmem>>, vector<1x8x1xf32>,
    return
  }
  func.func @transform_0(%arg0: i32) -> (i32, i32, i32) {
    %c0_i32 = arith.constant 0 : i32
    %c0_i32_0 = arith.constant 0 : i32
    %c0_i32_1 = arith.constant 0 : i32
    return %arg0, %c0_i32, %c0_i32_0 : i32, i32, i32
  }
  func.func @transform_1(%arg0: i32) -> (i32, i32, i32) {
    %c0_i32 = arith.constant 0 : i32
    %c0_i32_0 = arith.constant 0 : i32
    %c0_i32_1 = arith.constant 0 : i32
    %c0_i32_2 = arith.constant 0 : i32
    return %c0_i32, %c0_i32_0, %c0_i32_1 : i32, i32, i32
  }
  func.func @transform_2(%arg0: i32) -> (i32, i32, i32) {
    %c0_i32 = arith.constant 0 : i32
    %c0_i32_0 = arith.constant 0 : i32
    %c0_i32_1 = arith.constant 0 : i32
    %c0_i32_2 = arith.constant 0 : i32
    return %c0_i32, %c0_i32_0, %c0_i32_1 : i32, i32, i32
  }
  func.func @transform_3(%arg0: i32) -> (i32, i32) {
    %c0_i32 = arith.constant 0 : i32
    %c0_i32_0 = arith.constant 0 : i32
    %c0_i32_1 = arith.constant 0 : i32
    return %c0_i32, %c0_i32_0 : i32, i32
  }
  func.func @transform_4(%arg0: i32) -> (i32, i32) {
    %c0_i32 = arith.constant 0 : i32
    %c0_i32_0 = arith.constant 0 : i32
    %c0_i32_1 = arith.constant 0 : i32
    return %c0_i32, %c0_i32_0 : i32, i32
  }
  func.func @transform_5(%arg0: i32) -> (i32, i32, i32) {
    %c0_i32 = arith.constant 0 : i32
    %c0_i32_0 = arith.constant 0 : i32
    %c0_i32_1 = arith.constant 0 : i32
    return %arg0, %c0_i32, %c0_i32_0 : i32, i32, i32
  }
  func.func @transform_6(%arg0: i32) -> (i32, i32, i32) {
    %c0_i32 = arith.constant 0 : i32
    %c0_i32_0 = arith.constant 0 : i32
    %c0_i32_1 = arith.constant 0 : i32
    return %arg0, %c0_i32, %c0_i32_0 : i32, i32, i32
  }
  func.func @transform_7(%arg0: i32) -> (i32, i32, i32) {
    %c0_i32 = arith.constant 0 : i32
    %c0_i32_0 = arith.constant 0 : i32
    %c0_i32_1 = arith.constant 0 : i32
    return %arg0, %c0_i32, %c0_i32_0 : i32, i32, i32
  }
}

module attributes {stable_mosaic.version = 11 : i64} {
  func.func @_conv3x3_stats_kernel(%arg0: i32, %arg1: memref<1x8x512xbf16, #tpu.memory_space<vmem>>, %arg2: memref<9x8x8xbf16, #tpu.memory_space<vmem>>, %arg3: memref<9x1x512xf32, #tpu.memory_space<vmem>>, %arg4: memref<8x1xf32, #tpu.memory_space<vmem>>, %arg5: memref<8x1xf32, #tpu.memory_space<vmem>>, %arg6: memref<1x8x512xbf16, #tpu.memory_space<vmem>>, %arg7: memref<1x8x1xf32, #tpu.memory_space<vmem>>, %arg8: memref<1x8x1xf32, #tpu.memory_space<vmem>>) attributes {dimension_semantics = [#tpu.dimension_semantics<parallel>], iteration_bounds = array<i64: 1>, scalar_prefetch = 0 : i64, scratch_operands = 0 : i64, tpu.core_type = #tpu.core_type<tc>, window_params = [{transform_indices = @transform_0, window_bounds = array<i64: 1, 8, 512>}, {pipeline_mode = #tpu.pipeline_mode<synchronous>, transform_indices = @transform_1, window_bounds = array<i64: 9, 8, 8>}, {pipeline_mode = #tpu.pipeline_mode<synchronous>, transform_indices = @transform_2, window_bounds = array<i64: 9, 1, 512>}, {pipeline_mode = #tpu.pipeline_mode<synchronous>, transform_indices = @transform_3, window_bounds = array<i64: 8, 1>}, {pipeline_mode = #tpu.pipeline_mode<synchronous>, transform_indices = @transform_4, window_bounds = array<i64: 8, 1>}, {transform_indices = @transform_5, window_bounds = array<i64: 1, 8, 512>}, {transform_indices = @transform_6, window_bounds = array<i64: 1, 8, 1>}, {transform_indices = @transform_7, window_bounds = array<i64: 1, 8, 1>}]} {
    %c0 = arith.constant 0 : index
    %c0_0 = arith.constant 0 : index
    %c0_1 = arith.constant 0 : index
    %0 = vector.load %arg1[%c0, %c0_0, %c0_1] : memref<1x8x512xbf16, #tpu.memory_space<vmem>>, vector<1x8x512xbf16>
    %1 = vector.shape_cast %0 : vector<1x8x512xbf16> to vector<8x512xbf16>
    %2 = arith.extf %1 : vector<8x512xbf16> to vector<8x512xf32>
    %c0_2 = arith.constant 0 : index
    %c0_3 = arith.constant 0 : index
    %3 = vector.load %arg4[%c0_2, %c0_3] : memref<8x1xf32, #tpu.memory_space<vmem>>, vector<8x1xf32>
    %4 = vector.broadcast %3 : vector<8x1xf32> to vector<8x512xf32>
    %5 = arith.mulf %2, %4 : vector<8x512xf32>
    %c0_4 = arith.constant 0 : index
    %c0_5 = arith.constant 0 : index
    %6 = vector.load %arg5[%c0_4, %c0_5] : memref<8x1xf32, #tpu.memory_space<vmem>>, vector<8x1xf32>
    %7 = vector.broadcast %6 : vector<8x1xf32> to vector<8x512xf32>
    %8 = arith.addf %5, %7 : vector<8x512xf32>
    %cst = arith.constant 0.000000e+00 : f32
    %9 = vector.broadcast %cst : f32 to vector<8x512xf32>
    %10 = arith.maximumf %8, %9 : vector<8x512xf32>
    %c0_6 = arith.constant 0 : index
    %c0_7 = arith.constant 0 : index
    %c0_8 = arith.constant 0 : index
    %11 = vector.load %arg3[%c0_6, %c0_7, %c0_8] : memref<9x1x512xf32, #tpu.memory_space<vmem>>, vector<9x1x512xf32>
    %c17_i32 = arith.constant 17 : i32
    %12 = tpu.dynamic_rotate %10 by %c17_i32 dim 1 : vector<8x512xf32>, i32 -> vector<8x512xf32>
    %13 = vector.extract_strided_slice %11 {offsets = [0, 0, 0], sizes = [1, 1, 512], strides = [1, 1, 1]} : vector<9x1x512xf32> to vector<1x1x512xf32>
    %14 = vector.shape_cast %13 : vector<1x1x512xf32> to vector<1x512xf32>
    %15 = vector.broadcast %14 : vector<1x512xf32> to vector<8x512xf32>
    %16 = arith.mulf %12, %15 : vector<8x512xf32>
    %c0_9 = arith.constant 0 : index
    %c0_10 = arith.constant 0 : index
    %c0_11 = arith.constant 0 : index
    %17 = vector.load %arg2[%c0_9, %c0_10, %c0_11] : memref<9x8x8xbf16, #tpu.memory_space<vmem>>, vector<1x8x8xbf16>
    %18 = vector.shape_cast %17 : vector<1x8x8xbf16> to vector<8x8xbf16>
    %19 = arith.truncf %16 : vector<8x512xf32> to vector<8x512xbf16>
    %cst_12 = arith.constant dense<0.000000e+00> : vector<8x512xf32>
    %20 = tpu.matmul %18, %19, %cst_12 {dimension_numbers = #tpu.dot_dimension_numbers<[1], [0], [0], [1], [0, 0, 1, 1], [], []>} : vector<8x8xbf16>, vector<8x512xbf16>, vector<8x512xf32> -> vector<8x512xf32>
    %c16_i32 = arith.constant 16 : i32
    %21 = tpu.dynamic_rotate %10 by %c16_i32 dim 1 : vector<8x512xf32>, i32 -> vector<8x512xf32>
    %22 = vector.extract_strided_slice %11 {offsets = [1, 0, 0], sizes = [1, 1, 512], strides = [1, 1, 1]} : vector<9x1x512xf32> to vector<1x1x512xf32>
    %23 = vector.shape_cast %22 : vector<1x1x512xf32> to vector<1x512xf32>
    %24 = vector.broadcast %23 : vector<1x512xf32> to vector<8x512xf32>
    %25 = arith.mulf %21, %24 : vector<8x512xf32>
    %c1 = arith.constant 1 : index
    %c0_13 = arith.constant 0 : index
    %c0_14 = arith.constant 0 : index
    %26 = vector.load %arg2[%c1, %c0_13, %c0_14] : memref<9x8x8xbf16, #tpu.memory_space<vmem>>, vector<1x8x8xbf16>
    %27 = vector.shape_cast %26 : vector<1x8x8xbf16> to vector<8x8xbf16>
    %28 = arith.truncf %25 : vector<8x512xf32> to vector<8x512xbf16>
    %cst_15 = arith.constant dense<0.000000e+00> : vector<8x512xf32>
    %29 = tpu.matmul %27, %28, %cst_15 {dimension_numbers = #tpu.dot_dimension_numbers<[1], [0], [0], [1], [0, 0, 1, 1], [], []>} : vector<8x8xbf16>, vector<8x512xbf16>, vector<8x512xf32> -> vector<8x512xf32>
    %30 = arith.addf %20, %29 : vector<8x512xf32>
    %c15_i32 = arith.constant 15 : i32
    %31 = tpu.dynamic_rotate %10 by %c15_i32 dim 1 : vector<8x512xf32>, i32 -> vector<8x512xf32>
    %32 = vector.extract_strided_slice %11 {offsets = [2, 0, 0], sizes = [1, 1, 512], strides = [1, 1, 1]} : vector<9x1x512xf32> to vector<1x1x512xf32>
    %33 = vector.shape_cast %32 : vector<1x1x512xf32> to vector<1x512xf32>
    %34 = vector.broadcast %33 : vector<1x512xf32> to vector<8x512xf32>
    %35 = arith.mulf %31, %34 : vector<8x512xf32>
    %c2 = arith.constant 2 : index
    %c0_16 = arith.constant 0 : index
    %c0_17 = arith.constant 0 : index
    %36 = vector.load %arg2[%c2, %c0_16, %c0_17] : memref<9x8x8xbf16, #tpu.memory_space<vmem>>, vector<1x8x8xbf16>
    %37 = vector.shape_cast %36 : vector<1x8x8xbf16> to vector<8x8xbf16>
    %38 = arith.truncf %35 : vector<8x512xf32> to vector<8x512xbf16>
    %cst_18 = arith.constant dense<0.000000e+00> : vector<8x512xf32>
    %39 = tpu.matmul %37, %38, %cst_18 {dimension_numbers = #tpu.dot_dimension_numbers<[1], [0], [0], [1], [0, 0, 1, 1], [], []>} : vector<8x8xbf16>, vector<8x512xbf16>, vector<8x512xf32> -> vector<8x512xf32>
    %40 = arith.addf %30, %39 : vector<8x512xf32>
    %c1_i32 = arith.constant 1 : i32
    %41 = tpu.dynamic_rotate %10 by %c1_i32 dim 1 : vector<8x512xf32>, i32 -> vector<8x512xf32>
    %42 = vector.extract_strided_slice %11 {offsets = [3, 0, 0], sizes = [1, 1, 512], strides = [1, 1, 1]} : vector<9x1x512xf32> to vector<1x1x512xf32>
    %43 = vector.shape_cast %42 : vector<1x1x512xf32> to vector<1x512xf32>
    %44 = vector.broadcast %43 : vector<1x512xf32> to vector<8x512xf32>
    %45 = arith.mulf %41, %44 : vector<8x512xf32>
    %c3 = arith.constant 3 : index
    %c0_19 = arith.constant 0 : index
    %c0_20 = arith.constant 0 : index
    %46 = vector.load %arg2[%c3, %c0_19, %c0_20] : memref<9x8x8xbf16, #tpu.memory_space<vmem>>, vector<1x8x8xbf16>
    %47 = vector.shape_cast %46 : vector<1x8x8xbf16> to vector<8x8xbf16>
    %48 = arith.truncf %45 : vector<8x512xf32> to vector<8x512xbf16>
    %cst_21 = arith.constant dense<0.000000e+00> : vector<8x512xf32>
    %49 = tpu.matmul %47, %48, %cst_21 {dimension_numbers = #tpu.dot_dimension_numbers<[1], [0], [0], [1], [0, 0, 1, 1], [], []>} : vector<8x8xbf16>, vector<8x512xbf16>, vector<8x512xf32> -> vector<8x512xf32>
    %50 = arith.addf %40, %49 : vector<8x512xf32>
    %c4 = arith.constant 4 : index
    %c0_22 = arith.constant 0 : index
    %c0_23 = arith.constant 0 : index
    %51 = vector.load %arg2[%c4, %c0_22, %c0_23] : memref<9x8x8xbf16, #tpu.memory_space<vmem>>, vector<1x8x8xbf16>
    %52 = vector.shape_cast %51 : vector<1x8x8xbf16> to vector<8x8xbf16>
    %53 = arith.truncf %10 : vector<8x512xf32> to vector<8x512xbf16>
    %cst_24 = arith.constant dense<0.000000e+00> : vector<8x512xf32>
    %54 = tpu.matmul %52, %53, %cst_24 {dimension_numbers = #tpu.dot_dimension_numbers<[1], [0], [0], [1], [0, 0, 1, 1], [], []>} : vector<8x8xbf16>, vector<8x512xbf16>, vector<8x512xf32> -> vector<8x512xf32>
    %55 = arith.addf %50, %54 : vector<8x512xf32>
    %c511_i32 = arith.constant 511 : i32
    %56 = tpu.dynamic_rotate %10 by %c511_i32 dim 1 : vector<8x512xf32>, i32 -> vector<8x512xf32>
    %57 = vector.extract_strided_slice %11 {offsets = [5, 0, 0], sizes = [1, 1, 512], strides = [1, 1, 1]} : vector<9x1x512xf32> to vector<1x1x512xf32>
    %58 = vector.shape_cast %57 : vector<1x1x512xf32> to vector<1x512xf32>
    %59 = vector.broadcast %58 : vector<1x512xf32> to vector<8x512xf32>
    %60 = arith.mulf %56, %59 : vector<8x512xf32>
    %c5 = arith.constant 5 : index
    %c0_25 = arith.constant 0 : index
    %c0_26 = arith.constant 0 : index
    %61 = vector.load %arg2[%c5, %c0_25, %c0_26] : memref<9x8x8xbf16, #tpu.memory_space<vmem>>, vector<1x8x8xbf16>
    %62 = vector.shape_cast %61 : vector<1x8x8xbf16> to vector<8x8xbf16>
    %63 = arith.truncf %60 : vector<8x512xf32> to vector<8x512xbf16>
    %cst_27 = arith.constant dense<0.000000e+00> : vector<8x512xf32>
    %64 = tpu.matmul %62, %63, %cst_27 {dimension_numbers = #tpu.dot_dimension_numbers<[1], [0], [0], [1], [0, 0, 1, 1], [], []>} : vector<8x8xbf16>, vector<8x512xbf16>, vector<8x512xf32> -> vector<8x512xf32>
    %65 = arith.addf %55, %64 : vector<8x512xf32>
    %c497_i32 = arith.constant 497 : i32
    %66 = tpu.dynamic_rotate %10 by %c497_i32 dim 1 : vector<8x512xf32>, i32 -> vector<8x512xf32>
    %67 = vector.extract_strided_slice %11 {offsets = [6, 0, 0], sizes = [1, 1, 512], strides = [1, 1, 1]} : vector<9x1x512xf32> to vector<1x1x512xf32>
    %68 = vector.shape_cast %67 : vector<1x1x512xf32> to vector<1x512xf32>
    %69 = vector.broadcast %68 : vector<1x512xf32> to vector<8x512xf32>
    %70 = arith.mulf %66, %69 : vector<8x512xf32>
    %c6 = arith.constant 6 : index
    %c0_28 = arith.constant 0 : index
    %c0_29 = arith.constant 0 : index
    %71 = vector.load %arg2[%c6, %c0_28, %c0_29] : memref<9x8x8xbf16, #tpu.memory_space<vmem>>, vector<1x8x8xbf16>
    %72 = vector.shape_cast %71 : vector<1x8x8xbf16> to vector<8x8xbf16>
    %73 = arith.truncf %70 : vector<8x512xf32> to vector<8x512xbf16>
    %cst_30 = arith.constant dense<0.000000e+00> : vector<8x512xf32>
    %74 = tpu.matmul %72, %73, %cst_30 {dimension_numbers = #tpu.dot_dimension_numbers<[1], [0], [0], [1], [0, 0, 1, 1], [], []>} : vector<8x8xbf16>, vector<8x512xbf16>, vector<8x512xf32> -> vector<8x512xf32>
    %75 = arith.addf %65, %74 : vector<8x512xf32>
    %c496_i32 = arith.constant 496 : i32
    %76 = tpu.dynamic_rotate %10 by %c496_i32 dim 1 : vector<8x512xf32>, i32 -> vector<8x512xf32>
    %77 = vector.extract_strided_slice %11 {offsets = [7, 0, 0], sizes = [1, 1, 512], strides = [1, 1, 1]} : vector<9x1x512xf32> to vector<1x1x512xf32>
    %78 = vector.shape_cast %77 : vector<1x1x512xf32> to vector<1x512xf32>
    %79 = vector.broadcast %78 : vector<1x512xf32> to vector<8x512xf32>
    %80 = arith.mulf %76, %79 : vector<8x512xf32>
    %c7 = arith.constant 7 : index
    %c0_31 = arith.constant 0 : index
    %c0_32 = arith.constant 0 : index
    %81 = vector.load %arg2[%c7, %c0_31, %c0_32] : memref<9x8x8xbf16, #tpu.memory_space<vmem>>, vector<1x8x8xbf16>
    %82 = vector.shape_cast %81 : vector<1x8x8xbf16> to vector<8x8xbf16>
    %83 = arith.truncf %80 : vector<8x512xf32> to vector<8x512xbf16>
    %cst_33 = arith.constant dense<0.000000e+00> : vector<8x512xf32>
    %84 = tpu.matmul %82, %83, %cst_33 {dimension_numbers = #tpu.dot_dimension_numbers<[1], [0], [0], [1], [0, 0, 1, 1], [], []>} : vector<8x8xbf16>, vector<8x512xbf16>, vector<8x512xf32> -> vector<8x512xf32>
    %85 = arith.addf %75, %84 : vector<8x512xf32>
    %c495_i32 = arith.constant 495 : i32
    %86 = tpu.dynamic_rotate %10 by %c495_i32 dim 1 : vector<8x512xf32>, i32 -> vector<8x512xf32>
    %87 = vector.extract_strided_slice %11 {offsets = [8, 0, 0], sizes = [1, 1, 512], strides = [1, 1, 1]} : vector<9x1x512xf32> to vector<1x1x512xf32>
    %88 = vector.shape_cast %87 : vector<1x1x512xf32> to vector<1x512xf32>
    %89 = vector.broadcast %88 : vector<1x512xf32> to vector<8x512xf32>
    %90 = arith.mulf %86, %89 : vector<8x512xf32>
    %c8 = arith.constant 8 : index
    %c0_34 = arith.constant 0 : index
    %c0_35 = arith.constant 0 : index
    %91 = vector.load %arg2[%c8, %c0_34, %c0_35] : memref<9x8x8xbf16, #tpu.memory_space<vmem>>, vector<1x8x8xbf16>
    %92 = vector.shape_cast %91 : vector<1x8x8xbf16> to vector<8x8xbf16>
    %93 = arith.truncf %90 : vector<8x512xf32> to vector<8x512xbf16>
    %cst_36 = arith.constant dense<0.000000e+00> : vector<8x512xf32>
    %94 = tpu.matmul %92, %93, %cst_36 {dimension_numbers = #tpu.dot_dimension_numbers<[1], [0], [0], [1], [0, 0, 1, 1], [], []>} : vector<8x8xbf16>, vector<8x512xbf16>, vector<8x512xf32> -> vector<8x512xf32>
    %95 = arith.addf %85, %94 : vector<8x512xf32>
    %96 = arith.truncf %95 : vector<8x512xf32> to vector<8x512xbf16>
    %c0_37 = arith.constant 0 : index
    %c0_38 = arith.constant 0 : index
    %c0_39 = arith.constant 0 : index
    %97 = vector.load %arg6[%c0_37, %c0_38, %c0_39] : memref<1x8x512xbf16, #tpu.memory_space<vmem>>, vector<1x8x512xbf16>
    %98 = vector.shape_cast %97 : vector<1x8x512xbf16> to vector<8x512xbf16>
    %99 = vector.shape_cast %96 : vector<8x512xbf16> to vector<1x8x512xbf16>
    tpu.vector_store %arg6[%c0_37, %c0_38, %c0_39], %99 {strides = array<i32>} : memref<1x8x512xbf16, #tpu.memory_space<vmem>>, vector<1x8x512xbf16>,
    %cst_40 = arith.constant dense<0.000000e+00> : vector<8xf32>
    %100 = vector.multi_reduction <add>, %95, %cst_40 [1] : vector<8x512xf32> to vector<8xf32>
    %101 = vector.shape_cast %100 : vector<8xf32> to vector<8x1xf32>
    %c0_41 = arith.constant 0 : index
    %c0_42 = arith.constant 0 : index
    %c0_43 = arith.constant 0 : index
    %102 = vector.load %arg7[%c0_41, %c0_42, %c0_43] : memref<1x8x1xf32, #tpu.memory_space<vmem>>, vector<1x8x1xf32>
    %103 = vector.shape_cast %102 : vector<1x8x1xf32> to vector<8x1xf32>
    %104 = vector.shape_cast %101 : vector<8x1xf32> to vector<1x8x1xf32>
    tpu.vector_store %arg7[%c0_41, %c0_42, %c0_43], %104 {strides = array<i32>} : memref<1x8x1xf32, #tpu.memory_space<vmem>>, vector<1x8x1xf32>,
    %105 = arith.mulf %95, %95 : vector<8x512xf32>
    %cst_44 = arith.constant dense<0.000000e+00> : vector<8xf32>
    %106 = vector.multi_reduction <add>, %105, %cst_44 [1] : vector<8x512xf32> to vector<8xf32>
    %107 = vector.shape_cast %106 : vector<8xf32> to vector<8x1xf32>
    %c0_45 = arith.constant 0 : index
    %c0_46 = arith.constant 0 : index
    %c0_47 = arith.constant 0 : index
    %108 = vector.load %arg8[%c0_45, %c0_46, %c0_47] : memref<1x8x1xf32, #tpu.memory_space<vmem>>, vector<1x8x1xf32>
    %109 = vector.shape_cast %108 : vector<1x8x1xf32> to vector<8x1xf32>
    %110 = vector.shape_cast %107 : vector<8x1xf32> to vector<1x8x1xf32>
    tpu.vector_store %arg8[%c0_45, %c0_46, %c0_47], %110 {strides = array<i32>} : memref<1x8x1xf32, #tpu.memory_space<vmem>>, vector<1x8x1xf32>,
    return
  }
  func.func @transform_0(%arg0: i32) -> (i32, i32, i32) {
    %c0_i32 = arith.constant 0 : i32
    %c0_i32_0 = arith.constant 0 : i32
    %c0_i32_1 = arith.constant 0 : i32
    return %arg0, %c0_i32, %c0_i32_0 : i32, i32, i32
  }
  func.func @transform_1(%arg0: i32) -> (i32, i32, i32) {
    %c0_i32 = arith.constant 0 : i32
    %c0_i32_0 = arith.constant 0 : i32
    %c0_i32_1 = arith.constant 0 : i32
    %c0_i32_2 = arith.constant 0 : i32
    return %c0_i32, %c0_i32_0, %c0_i32_1 : i32, i32, i32
  }
  func.func @transform_2(%arg0: i32) -> (i32, i32, i32) {
    %c0_i32 = arith.constant 0 : i32
    %c0_i32_0 = arith.constant 0 : i32
    %c0_i32_1 = arith.constant 0 : i32
    %c0_i32_2 = arith.constant 0 : i32
    return %c0_i32, %c0_i32_0, %c0_i32_1 : i32, i32, i32
  }
  func.func @transform_3(%arg0: i32) -> (i32, i32) {
    %c0_i32 = arith.constant 0 : i32
    %c0_i32_0 = arith.constant 0 : i32
    %c0_i32_1 = arith.constant 0 : i32
    return %c0_i32, %c0_i32_0 : i32, i32
  }
  func.func @transform_4(%arg0: i32) -> (i32, i32) {
    %c0_i32 = arith.constant 0 : i32
    %c0_i32_0 = arith.constant 0 : i32
    %c0_i32_1 = arith.constant 0 : i32
    return %c0_i32, %c0_i32_0 : i32, i32
  }
  func.func @transform_5(%arg0: i32) -> (i32, i32, i32) {
    %c0_i32 = arith.constant 0 : i32
    %c0_i32_0 = arith.constant 0 : i32
    %c0_i32_1 = arith.constant 0 : i32
    return %arg0, %c0_i32, %c0_i32_0 : i32, i32, i32
  }
  func.func @transform_6(%arg0: i32) -> (i32, i32, i32) {
    %c0_i32 = arith.constant 0 : i32
    %c0_i32_0 = arith.constant 0 : i32
    %c0_i32_1 = arith.constant 0 : i32
    return %arg0, %c0_i32, %c0_i32_0 : i32, i32, i32
  }
  func.func @transform_7(%arg0: i32) -> (i32, i32, i32) {
    %c0_i32 = arith.constant 0 : i32
    %c0_i32_0 = arith.constant 0 : i32
    %c0_i32_1 = arith.constant 0 : i32
    return %arg0, %c0_i32, %c0_i32_0 : i32, i32, i32
  }
}

</mosaic_0001>

<bundles_post_ra>
// kernel: basic_block_pallas.5
= control target key start
LH: loop header
LB: loop body
LE: loop exit
PB: predicated region body
PF: predicated region fallthrough
CT: control target
= control target key end

     0   :  { %v65_v0 = vmov 0   ;;  %s127_s2 = inlined_call_operand.vmem [shape: f32[8,1], index: 2, kind: input, shape index: {}]   ;;  %s128_s3 = inlined_call_operand.vmem [shape: f32[8,1], index: 3, kind: input, shape index: {}]   ;;  %s129_s0 = inlined_call_operand.vmem [shape: bf16[1,8,512], index: 0, kind: input, shape index: {}]   ;;  %s130_s1 = inlined_call_operand.vmem [shape: f32[1,8,512], index: 1, kind: input, shape index: {}, may-alias: {1,4}]   ;;  %s131_s4 = inlined_call_operand.vmem [shape: f32[1,8,512], index: 4, kind: output, shape index: {}, may-alias: {1,4}]  }
   0x1   :  { %64 = vset.pattern.permute.xlu0 %v65_v0  ;;  %v23_v1 = vld [vmem:[%s127_s2] sm:$0xff]  ;;  %v18_v4 = vld [vmem:[%s129_s0 + $0x8] sm:$0xff]  ;;  %v45_v17 = vld [vmem:[%s130_s1 + $0x10] sm:$0xff] }
   0x2   :  { %26 = vperm.xlu0 %64, %v23_v1   ;;  %v33_v2 = vld [vmem:[%s128_s3] sm:$0xff]  ;;  %v21_v7 = vunpack.c.l.bf16 %v18_v4  ;;  %v22_v8 = vunpack.c.h.bf16 %v18_v4  ;;  %v44_v16 = vld [vmem:[%s130_s1 + $0x8] sm:$0xff]  ;;  %v46_v18 = vld [vmem:[%s130_s1 + $0x18] sm:$0xff] }
   0x3   :  { %v17_v3 = vld [vmem:[%s129_s0] sm:$0xff] }
   0x4   :  { %v19_v5 = vunpack.c.l.bf16 %v17_v3  ;;  %v20_v6 = vunpack.c.h.bf16 %v17_v3  ;;  %v43_v14 = vld [vmem:[%s130_s1] sm:$0xff] }
   0x6   :  { %36 = vperm.xlu0 %64, %v33_v2  }
  0x7d   :  { %v27_v9 = vpop.permute.xlu0 %26 }
  0x7e   :  { %v29_v10 = vmul.f32 %v27_v9, %v19_v5  ;;  %v30_v11 = vmul.f32 %v27_v9, %v20_v6  ;;  %v31_v12 = vmul.f32 %v27_v9, %v21_v7  ;;  %v32_v13 = vmul.f32 %v27_v9, %v22_v8 }
  0x81   :  { %v37_v15 = vpop.permute.xlu0 %36 }
  0x82   :  { %v39_v19 = vadd.f32 %v37_v15, %v29_v10  ;;  %v40_v20 = vadd.f32 %v37_v15, %v30_v11  ;;  %v41_v21 = vadd.f32 %v37_v15, %v31_v12  ;;  %v42_v22 = vadd.f32 %v37_v15, %v32_v13 }
  0x84   :  { %v47_v23 = vadd.f32 %v43_v14, %v39_v19  ;;  %v48_v24 = vadd.f32 %v44_v16, %v40_v20  ;;  %v49_v25 = vadd.f32 %v45_v17, %v41_v21  ;;  %v50_v26 = vadd.f32 %v46_v18, %v42_v22 }
  0x86   :  { %v51_v27 = vmax.f32 %v47_v23, 0.0  ;;  %v52_v28 = vmax.f32 %v48_v24, 0.0  ;;  %v53_v29 = vmax.f32 %v49_v25, 0.0  ;;  %v54_v30 = vmax.f32 %v50_v26, 0.0 }
  0x88   :  { %55 = vst [vmem:[%s131_s4] sm:$0xff] %v51_v27  ;;  %56 = vst [vmem:[%s131_s4 + $0x8] sm:$0xff] %v52_v28 }
  0x89   :  { %57 = vst [vmem:[%s131_s4 + $0x10] sm:$0xff] %v53_v29  ;;  %58 = vst [vmem:[%s131_s4 + $0x18] sm:$0xff] %v54_v30 }

// kernel: basic_block_pallas.3
= control target key start
LH: loop header
LB: loop body
LE: loop exit
PB: predicated region body
PF: predicated region fallthrough
CT: control target
= control target key end

     0   :  { %v1402_v2 = vmov 0   ;;  %s1403_s26 = smov 16   ;;  %s1404_s8 = smov 17   ;;  %v44_v5 = vlaneseq  ;;  %vm129_vm2 = vcmask 1043456   ;;  %vm125_vm3 = vcmask 64512   ;;  %s1760_s0 = inlined_call_operand.vmem [shape: f32[1,8,512], index: 0, kind: input, shape index: {}]   ;;  %s1761_s3 = inlined_call_operand.vmem [shape: f32[8,1], index: 3, kind: input, shape index: {}]   ;;  %s1762_s4 = inlined_call_operand.vmem [shape: f32[8,1], index: 4, kind: input, shape index: {}]   ;;  %s1763_s2 = inlined_call_operand.vmem [shape: f32[9,1,512], index: 2, kind: input, shape index: {}]   ;;  %s1764_s1 = inlined_call_operand.vmem [shape: bf16[9,8,8], index: 1, kind: input, shape index: {}]   ;;  %s1765_s5 = inlined_call_operand.vmem [shape: bf16[1,8,512], index: 5, kind: output, shape index: {0}]   ;;  %s1766_s6 = inlined_call_operand.vmem [shape: f32[1,8,1], index: 6, kind: output, shape index: {1}]   ;;  %s1767_s7 = inlined_call_operand.vmem [shape: f32[1,8,1], index: 7, kind: output, shape index: {2}]  }
   0x1   :  { %v1454_v0 = vld [vmem:[%s1760_s0 + $0x18] sm:$0xff]  ;;  %v1459_v1 = vld [vmem:[%s1760_s0] sm:$0xff]  ;;  %174 = vmatprep.mubr.bf16.mxu0 %v1402_v2  ;;  %215 = vmatprep.mubr.bf16.mxu1 %v1402_v2  ;;  %v1468_v3 = vld [vmem:[%s1760_s0 + $0x10] sm:$0xff]  ;;  %s1405_s9 = smov 15   ;;  %s1407_s10 = smov 127   ;;  %vm1321_vm10 = vcmask 7168  }
   0x2   :  { %87 = vrot.lane.b32.xlu1 %v1454_v0, %s1403_s26  ;;  %81 = vrot.lane.b32.xlu0 %v1459_v1, %s1403_s26  ;;  %v1473_v4 = vld [vmem:[%s1760_s0 + $0x8] sm:$0xff]  ;;  %s1406_s0 = smov 1   ;;  %s1408_s11 = smov 113   ;;  %v53_v6 = vshrl.u32 %v44_v5, 7  ;;  %v1505_v7 = vand.u32 127, %v44_v5 }
   0x3   :  { %s1409_s12 = smov 112   ;;  %s1410_s13 = smov 111   ;;  %v29_v9 = vld [vmem:[%s1763_s2 + $0x4] sm:$0xf]  ;;  %v28_v19 = vld [vmem:[%s1763_s2] sm:$0xf] }
   0x4   :  { %v1507_v8 = vsub.s32 0, %v53_v6  ;;  %vm89_vm0 = vcmp.lt.s32.totalorder %v1505_v7, 16  ;;  %v1514_v11 = vsub.s32 2, %v53_v6  ;;  %v1516_v12 = vsub.s32 1, %v53_v6  ;;  %v30_v44 = vld [vmem:[%s1763_s2 + $0x8] sm:$0xf] }
   0x5   :  { %v1518_v13 = vsub.s32 3, %v53_v6  ;;  %vm46_vm1 = vcmp.lt.s32.totalorder %v1505_v7, 17  ;;  %v1345_v45 = vld [vmem:[%s1764_s1 + $0x4] sm:$0xf]  ;;  %vm329_vm4 = vcmp.lt.s32.totalorder %v1505_v7, 15  ;;  %vm474_vm5 = vcmp.lt.s32.totalorder %v1505_v7, 1 }
   0x6   :  { %85 = vrot.lane.b32.xlu1 %v1468_v3, %s1403_s26  ;;  %83 = vrot.lane.b32.xlu0 %v1473_v4, %s1403_s26  ;;  %v98_v10 = vrot.slane %v29_v9, %v1507_v8  ;;  %v106_v18 = vrot.slane %v29_v9, %v1514_v11  ;;  %v102_v20 = vrot.slane %v29_v9, %v1516_v12  ;;  %vm726_vm6 = vcmp.lt.s32.totalorder %v1505_v7, 127 }
   0x7   :  { %v110_v21 = vrot.slane %v29_v9, %v1518_v13  ;;  %v59_v27 = vrot.slane %v28_v19, %v1516_v12  ;;  %v63_v38 = vrot.slane %v28_v19, %v1514_v11  ;;  %v55_v39 = vrot.slane %v28_v19, %v1507_v8 }
   0x8   :  { %v67_v43 = vrot.slane %v28_v19, %v1518_v13  ;;  %v342_v52 = vrot.slane %v30_v44, %v1516_v12  ;;  %v346_v62 = vrot.slane %v30_v44, %v1514_v11  ;;  %v338_v63 = vrot.slane %v30_v44, %v1507_v8 }
   0x9   :  { %vm871_vm7 = vcmp.lt.s32.totalorder %v1505_v7, 113  ;;  %vm1016_vm8 = vcmp.lt.s32.totalorder %v1505_v7, 112  ;;  %vm1161_vm9 = vcmp.lt.s32.totalorder %v1505_v7, 111  ;;  %v1379_v7 = vld [vmem:[%s1764_s1 + $0x1c] sm:$0xf] }
   0xa   :  { %38 = vrot.lane.b32.xlu1 %v1473_v4, %s1404_s8  ;;  %36 = vrot.lane.b32.xlu0 %v1459_v1, %s1404_s8 }
   0xe   :  { %40 = vrot.lane.b32.xlu1 %v1468_v3, %s1404_s8  ;;  %42 = vrot.lane.b32.xlu0 %v1454_v0, %s1404_s8 }
  0x12   :  { %323 = vrot.lane.b32.xlu1 %v1473_v4, %s1405_s9  ;;  %321 = vrot.lane.b32.xlu0 %v1459_v1, %s1405_s9 }
  0x16   :  { %325 = vrot.lane.b32.xlu1 %v1468_v3, %s1405_s9  ;;  %327 = vrot.lane.b32.xlu0 %v1454_v0, %s1405_s9 }
  0x1a   :  { %468 = vrot.lane.b32.xlu1 %v1473_v4, %s1406_s0  ;;  %466 = vrot.lane.b32.xlu0 %v1459_v1, %s1406_s0 }
  0x1e   :  { %470 = vrot.lane.b32.xlu1 %v1468_v3, %s1406_s0  ;;  %472 = vrot.lane.b32.xlu0 %v1454_v0, %s1406_s0 }
  0x22   :  { %720 = vrot.lane.b32.xlu1 %v1473_v4, %s1407_s10  ;;  %718 = vrot.lane.b32.xlu0 %v1459_v1, %s1407_s10 }
  0x26   :  { %724 = vrot.lane.b32.xlu1 %v1454_v0, %s1407_s10  ;;  %722 = vrot.lane.b32.xlu0 %v1468_v3, %s1407_s10 }
  0x2a   :  { %865 = vrot.lane.b32.xlu1 %v1473_v4, %s1408_s11  ;;  %863 = vrot.lane.b32.xlu0 %v1459_v1, %s1408_s11 }
  0x2e   :  { %869 = vrot.lane.b32.xlu1 %v1454_v0, %s1408_s11  ;;  %867 = vrot.lane.b32.xlu0 %v1468_v3, %s1408_s11 }
  0x32   :  { %1010 = vrot.lane.b32.xlu1 %v1473_v4, %s1409_s12  ;;  %1008 = vrot.lane.b32.xlu0 %v1459_v1, %s1409_s12 }
  0x36   :  { %1014 = vrot.lane.b32.xlu1 %v1454_v0, %s1409_s12  ;;  %1012 = vrot.lane.b32.xlu0 %v1468_v3, %s1409_s12 }
  0x3a   :  { %1155 = vrot.lane.b32.xlu1 %v1473_v4, %s1410_s13  ;;  %1153 = vrot.lane.b32.xlu0 %v1459_v1, %s1410_s13 }
  0x3e   :  { %1159 = vrot.lane.b32.xlu1 %v1454_v0, %s1410_s13  ;;  %1157 = vrot.lane.b32.xlu0 %v1468_v3, %s1410_s13 }
  0x74   :  { %v88_v14 = vpop.permute.xlu1 %87  ;;  %v82_v15 = vpop.permute.xlu0 %81 }
  0x75   :  { %v93_v16 = vsel %vm89_vm0, %v88_v14, %v82_v15 }
  0x76   :  { %v115_v17 = vmul.f32 %v98_v10, %v93_v16  ;;  %v350_v10 = vrot.slane %v30_v44, %v1518_v13 }
  0x78   :  { %v86_v22 = vpop.permute.xlu1 %85  ;;  %v84_v23 = vpop.permute.xlu0 %83  ;;  %v121_v31 = vpack.c.bf16 %v115_v17, %v115_v17 }
  0x79   :  { %v90_v24 = vsel %vm89_vm0, %v86_v22, %v88_v14  ;;  %v91_v25 = vsel %vm89_vm0, %v84_v23, %v86_v22  ;;  %v92_v26 = vsel %vm89_vm0, %v82_v15, %v84_v23  ;;  %v31_v14 = vld [vmem:[%s1763_s2 + $0xc] sm:$0xf]  ;;  %v76_v15 = vld [vmem:[%s1764_s1] sm:$0xf] }
  0x7a   :  { %v117_v28 = vmul.f32 %v106_v18, %v91_v25  ;;  %v116_v29 = vmul.f32 %v102_v20, %v92_v26  ;;  %v118_v30 = vmul.f32 %v110_v21, %v90_v24  ;;  %v131_v41 = vsel %vm129_vm2, %v121_v31, 0 }
  0x7b   :  { %v487_v22 = vrot.slane %v31_v14, %v1516_v12 }
  0x7c   :  { %v39_v32 = vpop.permute.xlu1 %38  ;;  %v37_v33 = vpop.permute.xlu0 %36  ;;  %v122_v34 = vpack.c.bf16 %v116_v29, %v116_v29  ;;  %v124_v35 = vpack.c.bf16 %v118_v30, %v118_v30  ;;  %v123_v36 = vpack.c.bf16 %v117_v28, %v117_v28 }
  0x7d   :  { %v49_v37 = vsel %vm46_vm1, %v37_v33, %v39_v32 }
  0x7e   :  { %v73_v40 = vmul.f32 %v59_v27, %v49_v37  ;;  %1346 = vmatprep.subr.msk.bf16.mxu0 %vm129_vm2, %v122_v34  ;;  %1348 = vmatprep.subr.msk.bf16.mxu1 %vm129_vm2, %v124_v35  ;;  %v137_v42 = vsel %vm129_vm2, %v123_v36, 0  ;;  %v495_v37 = vrot.slane %v31_v14, %v1518_v13 }
  0x7f   :  { %157 = vmatpush1.bf16.msra.mxu0 %v131_v41  ;;  %198 = vmatpush1.bf16.msra.mxu1 %v137_v42 }
  0x80   :  { %v78_v46 = vpack.c.bf16 %v73_v40, %v73_v40  ;;  %v41_v47 = vpop.permute.xlu1 %40  ;;  %v43_v48 = vpop.permute.xlu0 %42 }
  0x81   :  { %v48_v49 = vsel %vm46_vm1, %v39_v32, %v41_v47  ;;  %v47_v50 = vsel %vm46_vm1, %v41_v47, %v43_v48  ;;  %v50_v51 = vsel %vm46_vm1, %v43_v48, %v37_v33  ;;  %v491_v32 = vrot.slane %v31_v14, %v1514_v11 }
  0x82   :  { %v74_v53 = vmul.f32 %v63_v38, %v48_v49  ;;  %v72_v54 = vmul.f32 %v55_v39, %v50_v51  ;;  %v75_v55 = vmul.f32 %v67_v43, %v47_v50  ;;  %1347 = vmatmul.mubr.msk.bf16.vlgmr.msra.gmra.mxu0 %vm125_vm3, %v1345_v45  ;;  %1349 = vmatmul.mubr.msk.bf16.vlgmr.msra.gmra.mxu1 %vm125_vm3, %v1345_v45  ;;  %v32_v38 = vld [vmem:[%s1763_s2 + $0x14] sm:$0xf]  ;;  %v1354_v39 = vld [vmem:[%s1764_s1 + $0x8] sm:$0xf] }
  0x83   :  { %1350 = vmatprep.subr.msk.bf16.mxu0 %vm129_vm2, %v78_v46  ;;  %271 = vmatprep.mubr.bf16.mxu0 %v1402_v2  ;;  %v483_v33 = vrot.slane %v31_v14, %v1507_v8  ;;  %v735_v46 = vrot.slane %v32_v38, %v1507_v8  ;;  %v614_v50 = vpack.c.bf16 %v1473_v4, %v1473_v4 }
  0x84   :  { %v79_v56 = vpack.c.bf16 %v74_v53, %v74_v53  ;;  %v77_v57 = vpack.c.bf16 %v72_v54, %v72_v54  ;;  %v80_v58 = vpack.c.bf16 %v75_v55, %v75_v55  ;;  %v324_v59 = vpop.permute.xlu1 %323  ;;  %v322_v60 = vpop.permute.xlu0 %321  ;;  %312 = vmatprep.mubr.bf16.mxu1 %v1402_v2  ;;  %v616_v51 = vpack.c.bf16 %v1454_v0, %v1454_v0 }
  0x85   :  { %v332_v61 = vsel %vm329_vm4, %v322_v60, %v324_v59  ;;  %v747_v4 = vrot.slane %v32_v38, %v1518_v13 }
  0x86   :  { %v356_v5 = vmul.f32 %v342_v52, %v332_v61  ;;  %1352 = vmatprep.subr.msk.bf16.mxu1 %vm129_vm2, %v80_v58  ;;  %v228_v6 = vsel %vm129_vm2, %v77_v57, 0  ;;  %v234_v9 = vsel %vm129_vm2, %v79_v56, 0  ;;  %v613_v52 = vpack.c.bf16 %v1459_v1, %v1459_v1 }
  0x87   :  { %254 = vmatpush1.bf16.msra.mxu0 %v228_v6  ;;  %295 = vmatpush1.bf16.msra.mxu1 %v234_v9  ;;  %v615_v58 = vpack.c.bf16 %v1468_v3, %v1468_v3  ;;  %v743_v61 = vrot.slane %v32_v38, %v1514_v11  ;;  %v1359_v3 = vld [vmem:[%s1764_s1 + $0xc] sm:$0xf] }
  0x88   :  { %v362_v16 = vpack.c.bf16 %v356_v5, %v356_v5  ;;  %v326_v17 = vpop.permute.xlu1 %325  ;;  %v328_v18 = vpop.permute.xlu0 %327  ;;  %v621_v6 = vsel %vm129_vm2, %v613_v52, 0 }
  0x89   :  { %v331_v19 = vsel %vm329_vm4, %v324_v59, %v326_v17  ;;  %v330_v20 = vsel %vm329_vm4, %v326_v17, %v328_v18  ;;  %v333_v21 = vsel %vm329_vm4, %v328_v18, %v322_v60  ;;  %v739_v60 = vrot.slane %v32_v38, %v1516_v12 }
  0x8a   :  { %v357_v23 = vmul.f32 %v346_v62, %v331_v19  ;;  %v355_v24 = vmul.f32 %v338_v63, %v333_v21  ;;  %v358_v25 = vmul.f32 %v350_v10, %v330_v20  ;;  %1351 = vmatmul.mubr.msk.bf16.vlgmr.msra.gmra.mxu0 %vm125_vm3, %v76_v15  ;;  %1353 = vmatmul.mubr.msk.bf16.vlgmr.msra.gmra.mxu1 %vm125_vm3, %v76_v15  ;;  %v627_v9 = vsel %vm129_vm2, %v615_v58, 0  ;;  %v33_v10 = vld [vmem:[%s1763_s2 + $0x18] sm:$0xf] }
  0x8b   :  { %1355 = vmatprep.subr.msk.bf16.mxu0 %vm129_vm2, %v362_v16  ;;  %412 = vmatprep.mubr.bf16.mxu0 %v1402_v2  ;;  %v880_v21 = vrot.slane %v33_v10, %v1507_v8 }
  0x8c   :  { %v363_v26 = vpack.c.bf16 %v357_v23, %v357_v23  ;;  %v361_v27 = vpack.c.bf16 %v355_v24, %v355_v24  ;;  %v364_v28 = vpack.c.bf16 %v358_v25, %v358_v25  ;;  %v469_v29 = vpop.permute.xlu1 %468  ;;  %v467_v30 = vpop.permute.xlu0 %466  ;;  %453 = vmatprep.mubr.bf16.mxu1 %v1402_v2 }
  0x8d   :  { %v477_v31 = vsel %vm474_vm5, %v467_v30, %v469_v29 }
  0x8e   :  { %v501_v34 = vmul.f32 %v487_v22, %v477_v31  ;;  %1357 = vmatprep.subr.msk.bf16.mxu1 %vm129_vm2, %v364_v28  ;;  %v369_v35 = vsel %vm129_vm2, %v361_v27, 0  ;;  %v375_v36 = vsel %vm129_vm2, %v363_v26, 0  ;;  %v892_v28 = vrot.slane %v33_v10, %v1518_v13 }
  0x8f   :  { %395 = vmatpush1.bf16.msra.mxu0 %v369_v35  ;;  %436 = vmatpush1.bf16.msra.mxu1 %v375_v36 }
  0x90   :  { %v507_v40 = vpack.c.bf16 %v501_v34, %v501_v34  ;;  %v471_v41 = vpop.permute.xlu1 %470  ;;  %v473_v42 = vpop.permute.xlu0 %472 }
  0x91   :  { %v476_v43 = vsel %vm474_vm5, %v469_v29, %v471_v41  ;;  %v475_v44 = vsel %vm474_vm5, %v471_v41, %v473_v42  ;;  %v478_v45 = vsel %vm474_vm5, %v473_v42, %v467_v30  ;;  %v884_v29 = vrot.slane %v33_v10, %v1516_v12 }
  0x92   :  { %v502_v47 = vmul.f32 %v491_v32, %v476_v43  ;;  %v500_v48 = vmul.f32 %v483_v33, %v478_v45  ;;  %v503_v49 = vmul.f32 %v495_v37, %v475_v44  ;;  %1356 = vmatmul.mubr.msk.bf16.vlgmr.msra.gmra.mxu0 %vm125_vm3, %v1354_v39  ;;  %1358 = vmatmul.mubr.msk.bf16.vlgmr.msra.gmra.mxu1 %vm125_vm3, %v1354_v39  ;;  %v1364_v32 = vld [vmem:[%s1764_s1 + $0x10] sm:$0xf]  ;;  %v34_v37 = vld [vmem:[%s1763_s2 + $0x1c] sm:$0xf] }
  0x93   :  { %1360 = vmatprep.subr.msk.bf16.mxu0 %vm129_vm2, %v507_v40  ;;  %557 = vmatprep.mubr.bf16.mxu0 %v1402_v2  ;;  %v888_v30 = vrot.slane %v33_v10, %v1514_v11  ;;  %v1025_v45 = vrot.slane %v34_v37, %v1507_v8  ;;  %v1037_v52 = vrot.slane %v34_v37, %v1518_v13 }
  0x94   :  { %v508_v53 = vpack.c.bf16 %v502_v47, %v502_v47  ;;  %v506_v54 = vpack.c.bf16 %v500_v48, %v500_v48  ;;  %v509_v55 = vpack.c.bf16 %v503_v49, %v503_v49  ;;  %v721_v56 = vpop.permute.xlu1 %720  ;;  %v719_v57 = vpop.permute.xlu0 %718  ;;  %598 = vmatprep.mubr.bf16.mxu1 %v1402_v2 }
  0x95   :  { %v729_v59 = vsel %vm726_vm6, %v719_v57, %v721_v56 }
  0x96   :  { %1362 = vmatprep.subr.msk.bf16.mxu1 %vm129_vm2, %v509_v55  ;;  %v514_v0 = vsel %vm129_vm2, %v506_v54, 0  ;;  %v520_v1 = vsel %vm129_vm2, %v508_v53, 0  ;;  %v752_v62 = vmul.f32 %v735_v46, %v729_v59  ;;  %v1029_v53 = vrot.slane %v34_v37, %v1516_v12 }
  0x97   :  { %540 = vmatpush1.bf16.msra.mxu0 %v514_v0  ;;  %581 = vmatpush1.bf16.msra.mxu1 %v520_v1  ;;  %v1033_v54 = vrot.slane %v34_v37, %v1514_v11  ;;  %v35_v0 = vld [vmem:[%s1763_s2 + $0x20] sm:$0xf] }
  0x98   :  { %v725_v63 = vpop.permute.xlu1 %724  ;;  %v723_v5 = vpop.permute.xlu0 %722  ;;  %1365 = vmatprep.subr.msk.bf16.mxu0 %vm129_vm2, %v614_v50  ;;  %1367 = vmatprep.subr.msk.bf16.mxu1 %vm129_vm2, %v616_v51  ;;  %v758_v20 = vpack.c.bf16 %v752_v62, %v752_v62 }
  0x99   :  { %v730_v14 = vsel %vm726_vm6, %v725_v63, %v719_v57  ;;  %v727_v15 = vsel %vm726_vm6, %v723_v5, %v725_v63  ;;  %v728_v16 = vsel %vm726_vm6, %v721_v56, %v723_v5  ;;  %v1369_v56 = vld [vmem:[%s1764_s1 + $0x14] sm:$0xf] }
  0x9a   :  { %1361 = vmatmul.mubr.msk.bf16.vlgmr.msra.gmra.mxu0 %vm125_vm3, %v1359_v3  ;;  %1363 = vmatmul.mubr.msk.bf16.vlgmr.msra.gmra.mxu1 %vm125_vm3, %v1359_v3  ;;  %v755_v17 = vmul.f32 %v747_v4, %v730_v14  ;;  %v753_v18 = vmul.f32 %v739_v60, %v728_v16  ;;  %v754_v19 = vmul.f32 %v743_v61, %v727_v15  ;;  %v766_v33 = vsel %vm129_vm2, %v758_v20, 0 }
  0x9b   :  { %647 = vmatpush1.bf16.msra.mxu0 %v621_v6  ;;  %688 = vmatpush1.bf16.msra.mxu1 %v627_v9  ;;  %v1170_v6 = vrot.slane %v35_v0, %v1507_v8  ;;  %v1174_v8 = vrot.slane %v35_v0, %v1516_v12 }
  0x9c   :  { %v761_v22 = vpack.c.bf16 %v755_v17, %v755_v17  ;;  %v759_v23 = vpack.c.bf16 %v753_v18, %v753_v18  ;;  %v760_v24 = vpack.c.bf16 %v754_v19, %v754_v19  ;;  %v866_v25 = vpop.permute.xlu1 %865  ;;  %v864_v26 = vpop.permute.xlu0 %863  ;;  %664 = vmatprep.mubr.bf16.mxu0 %v1402_v2  ;;  %705 = vmatprep.mubr.bf16.mxu1 %v1402_v2 }
  0x9d   :  { %v874_v27 = vsel %vm871_vm7, %v864_v26, %v866_v25  ;;  %v1182_v18 = vrot.slane %v35_v0, %v1518_v13  ;;  %v1178_v19 = vrot.slane %v35_v0, %v1514_v11 }
  0x9e   :  { %1370 = vmatprep.subr.msk.bf16.mxu0 %vm129_vm2, %v759_v23  ;;  %1372 = vmatprep.subr.msk.bf16.mxu1 %vm129_vm2, %v761_v22  ;;  %v897_v31 = vmul.f32 %v880_v21, %v874_v27  ;;  %v772_v36 = vsel %vm129_vm2, %v760_v24, 0  ;;  %v1374_v21 = vld [vmem:[%s1764_s1 + $0x18] sm:$0xf] }
  0xa0   :  { %v870_v34 = vpop.permute.xlu1 %869  ;;  %v868_v35 = vpop.permute.xlu0 %867  ;;  %v903_v44 = vpack.c.bf16 %v897_v31, %v897_v31 }
  0xa1   :  { %v875_v38 = vsel %vm871_vm7, %v870_v34, %v864_v26  ;;  %v872_v39 = vsel %vm871_vm7, %v868_v35, %v870_v34  ;;  %v873_v40 = vsel %vm871_vm7, %v866_v25, %v868_v35  ;;  %v1384_v35 = vld [vmem:[%s1764_s1 + $0x20] sm:$0xf] }
  0xa2   :  { %1366 = vmatmul.mubr.msk.bf16.vlgmr.msra.gmra.mxu0 %vm125_vm3, %v1364_v32  ;;  %1368 = vmatmul.mubr.msk.bf16.vlgmr.msra.gmra.mxu1 %vm125_vm3, %v1364_v32  ;;  %v900_v41 = vmul.f32 %v892_v28, %v875_v38  ;;  %v898_v42 = vmul.f32 %v884_v29, %v873_v40  ;;  %v899_v43 = vmul.f32 %v888_v30, %v872_v39  ;;  %v911_v57 = vsel %vm129_vm2, %v903_v44, 0 }
  0xa3   :  { %792 = vmatpush1.bf16.msra.mxu0 %v766_v33  ;;  %833 = vmatpush1.bf16.msra.mxu1 %v772_v36 }
  0xa4   :  { %v906_v46 = vpack.c.bf16 %v900_v41, %v900_v41  ;;  %v904_v47 = vpack.c.bf16 %v898_v42, %v898_v42  ;;  %v905_v48 = vpack.c.bf16 %v899_v43, %v899_v43  ;;  %v1011_v49 = vpop.permute.xlu1 %1010  ;;  %v1009_v50 = vpop.permute.xlu0 %1008  ;;  %809 = vmatprep.mubr.bf16.mxu0 %v1402_v2  ;;  %850 = vmatprep.mubr.bf16.mxu1 %v1402_v2 }
  0xa5   :  { %v1019_v51 = vsel %vm1016_vm8, %v1009_v50, %v1011_v49 }
  0xa6   :  { %1375 = vmatprep.subr.msk.bf16.mxu0 %vm129_vm2, %v904_v47  ;;  %1377 = vmatprep.subr.msk.bf16.mxu1 %vm129_vm2, %v906_v46  ;;  %v1042_v55 = vmul.f32 %v1025_v45, %v1019_v51  ;;  %v917_v4 = vsel %vm129_vm2, %v905_v48, 0 }
  0xa8   :  { %v1015_v58 = vpop.permute.xlu1 %1014  ;;  %v1013_v59 = vpop.permute.xlu0 %1012  ;;  %v1048_v5 = vpack.c.bf16 %v1042_v55, %v1042_v55 }
  0xa9   :  { %v1020_v1 = vsel %vm1016_vm8, %v1015_v58, %v1009_v50  ;;  %v1017_v60 = vsel %vm1016_vm8, %v1013_v59, %v1015_v58  ;;  %v1018_v61 = vsel %vm1016_vm8, %v1011_v49, %v1013_v59 }
  0xaa   :  { %1371 = vmatmul.mubr.msk.bf16.vlgmr.msra.gmra.mxu0 %vm125_vm3, %v1369_v56  ;;  %1373 = vmatmul.mubr.msk.bf16.vlgmr.msra.gmra.mxu1 %vm125_vm3, %v1369_v56  ;;  %v1045_v62 = vmul.f32 %v1037_v52, %v1020_v1  ;;  %v1043_v3 = vmul.f32 %v1029_v53, %v1018_v61  ;;  %v1044_v63 = vmul.f32 %v1033_v54, %v1017_v60  ;;  %v1056_v22 = vsel %vm129_vm2, %v1048_v5, 0 }
  0xab   :  { %937 = vmatpush1.bf16.msra.mxu0 %v911_v57  ;;  %978 = vmatpush1.bf16.msra.mxu1 %v917_v4 }
  0xac   :  { %v1051_v9 = vpack.c.bf16 %v1045_v62, %v1045_v62  ;;  %v1049_v10 = vpack.c.bf16 %v1043_v3, %v1043_v3  ;;  %v1050_v14 = vpack.c.bf16 %v1044_v63, %v1044_v63  ;;  %v1156_v15 = vpop.permute.xlu1 %1155  ;;  %v1154_v16 = vpop.permute.xlu0 %1153  ;;  %954 = vmatprep.mubr.bf16.mxu0 %v1402_v2  ;;  %995 = vmatprep.mubr.bf16.mxu1 %v1402_v2 }
  0xad   :  { %v1164_v17 = vsel %vm1161_vm9, %v1154_v16, %v1156_v15 }
  0xae   :  { %1380 = vmatprep.subr.msk.bf16.mxu0 %vm129_vm2, %v1049_v10  ;;  %1382 = vmatprep.subr.msk.bf16.mxu1 %vm129_vm2, %v1051_v9  ;;  %v1187_v20 = vmul.f32 %v1170_v6, %v1164_v17  ;;  %v1062_v25 = vsel %vm129_vm2, %v1050_v14, 0 }
  0xb0   :  { %v1160_v23 = vpop.permute.xlu1 %1159  ;;  %v1158_v24 = vpop.permute.xlu0 %1157  ;;  %v1193_v29 = vpack.c.bf16 %v1187_v20, %v1187_v20 }
  0xb1   :  { %v1165_v26 = vsel %vm1161_vm9, %v1160_v23, %v1154_v16  ;;  %v1162_v13 = vsel %vm1161_vm9, %v1158_v24, %v1160_v23  ;;  %v1163_v11 = vsel %vm1161_vm9, %v1156_v15, %v1158_v24 }
  0xb2   :  { %1376 = vmatmul.mubr.msk.bf16.vlgmr.msra.gmra.mxu0 %vm125_vm3, %v1374_v21  ;;  %1378 = vmatmul.mubr.msk.bf16.vlgmr.msra.gmra.mxu1 %vm125_vm3, %v1374_v21  ;;  %v1190_v12 = vmul.f32 %v1182_v18, %v1165_v26  ;;  %v1188_v27 = vmul.f32 %v1174_v8, %v1163_v11  ;;  %v1189_v28 = vmul.f32 %v1178_v19, %v1162_v13  ;;  %v1201_v33 = vsel %vm129_vm2, %v1193_v29, 0 }
  0xb3   :  { %1082 = vmatpush1.bf16.msra.mxu0 %v1056_v22  ;;  %1123 = vmatpush1.bf16.msra.mxu1 %v1062_v25 }
  0xb4   :  { %v1196_v30 = vpack.c.bf16 %v1190_v12, %v1190_v12  ;;  %v1194_v31 = vpack.c.bf16 %v1188_v27, %v1188_v27  ;;  %v1195_v32 = vpack.c.bf16 %v1189_v28, %v1189_v28  ;;  %1099 = vmatprep.mubr.bf16.mxu0 %v1402_v2  ;;  %1140 = vmatprep.mubr.bf16.mxu1 %v1402_v2 }
  0xb6   :  { %1385 = vmatprep.subr.msk.bf16.mxu0 %vm129_vm2, %v1194_v31  ;;  %1387 = vmatprep.subr.msk.bf16.mxu1 %vm129_vm2, %v1196_v30  ;;  %v1207_v34 = vsel %vm129_vm2, %v1195_v32, 0 }
  0xba   :  { %1381 = vmatmul.mubr.msk.bf16.vlgmr.msra.gmra.mxu0 %vm125_vm3, %v1379_v7  ;;  %1383 = vmatmul.mubr.msk.bf16.vlgmr.msra.gmra.mxu1 %vm125_vm3, %v1379_v7 }
  0xbb   :  { %1227 = vmatpush1.bf16.msra.mxu0 %v1201_v33  ;;  %1268 = vmatpush1.bf16.msra.mxu1 %v1207_v34 }
  0xbc   :  { %1244 = vmatprep.mubr.bf16.mxu0 %v1402_v2  ;;  %1285 = vmatprep.mubr.bf16.mxu1 %v1402_v2 }
  0xc2   :  { %1386 = vmatmul.mubr.msk.bf16.vlgmr.msra.gmra.mxu0 %vm125_vm3, %v1384_v35  ;;  %1388 = vmatmul.mubr.msk.bf16.vlgmr.msra.gmra.mxu1 %vm125_vm3, %v1384_v35 }
 0x142   :  { %v176_v36 = vpop.f32.mrf.mxu0  ;;  %v217_v37 = vpop.f32.mrf.mxu1 }
 0x144   :  { %v178_v38 = vpop.f32.mrf.mxu0  ;;  %v219_v39 = vpop.f32.mrf.mxu1 }
 0x146   :  { %v180_v40 = vpop.f32.mrf.mxu0  ;;  %v221_v41 = vpop.f32.mrf.mxu1 }
 0x148   :  { %v181_v42 = vpop.f32.mrf.mxu0  ;;  %v222_v43 = vpop.f32.mrf.mxu1 }
 0x14a   :  { %v273_v44 = vpop.f32.mrf.mxu0  ;;  %v314_v45 = vpop.f32.mrf.mxu1 }
 0x14b   :  { %v274_v11 = vadd.f32 %v273_v44, %v176_v36  ;;  %v315_v28 = vadd.f32 %v314_v45, %v217_v37 }
 0x14c   :  { %v275_v46 = vpop.f32.mrf.mxu0  ;;  %v316_v2 = vpop.f32.mrf.mxu1 }
 0x14d   :  { %v276_v29 = vadd.f32 %v275_v46, %v178_v38  ;;  %v317_v30 = vadd.f32 %v316_v2, %v219_v39 }
 0x14e   :  { %v277_v47 = vpop.f32.mrf.mxu0  ;;  %v318_v48 = vpop.f32.mrf.mxu1 }
 0x150   :  { %v278_v49 = vpop.f32.mrf.mxu0  ;;  %v319_v50 = vpop.f32.mrf.mxu1 }
 0x152   :  { %v414_v51 = vpop.f32.mrf.mxu0  ;;  %v455_v52 = vpop.f32.mrf.mxu1 }
 0x153   :  { %v462_v31 = vadd.f32 %v414_v51, %v274_v11  ;;  %v464_v33 = vadd.f32 %v455_v52, %v315_v28 }
 0x154   :  { %v416_v53 = vpop.f32.mrf.mxu0  ;;  %v457_v54 = vpop.f32.mrf.mxu1 }
 0x155   :  { %v463_v34 = vadd.f32 %v416_v53, %v276_v29  ;;  %v465_v35 = vadd.f32 %v457_v54, %v317_v30 }
 0x156   :  { %v418_v55 = vpop.f32.mrf.mxu0  ;;  %v459_v56 = vpop.f32.mrf.mxu1 }
 0x158   :  { %v419_v57 = vpop.f32.mrf.mxu0  ;;  %v460_v58 = vpop.f32.mrf.mxu1 }
 0x15a   :  { %v559_v59 = vpop.f32.mrf.mxu0  ;;  %v600_v4 = vpop.f32.mrf.mxu1 }
 0x15b   :  { %v607_v40 = vadd.f32 %v559_v59, %v462_v31  ;;  %v609_v43 = vadd.f32 %v600_v4, %v464_v33 }
 0x15c   :  { %v561_v0 = vpop.f32.mrf.mxu0  ;;  %v602_v1 = vpop.f32.mrf.mxu1 }
 0x15d   :  { %v608_v47 = vadd.f32 %v561_v0, %v463_v34  ;;  %v610_v48 = vadd.f32 %v602_v1, %v465_v35 }
 0x15e   :  { %v563_v60 = vpop.f32.mrf.mxu0  ;;  %v604_v61 = vpop.f32.mrf.mxu1 }
 0x160   :  { %v564_v62 = vpop.f32.mrf.mxu0  ;;  %v605_v3 = vpop.f32.mrf.mxu1 }
 0x162   :  { %v666_v63 = vpop.f32.mrf.mxu0  ;;  %v707_v5 = vpop.f32.mrf.mxu1 }
 0x163   :  { %v714_v49 = vadd.f32 %v666_v63, %v607_v40  ;;  %v716_v44 = vadd.f32 %v707_v5, %v609_v43 }
 0x164   :  { %v668_v6 = vpop.f32.mrf.mxu0  ;;  %v709_v9 = vpop.f32.mrf.mxu1 }
 0x165   :  { %v715_v55 = vadd.f32 %v668_v6, %v608_v47  ;;  %v717_v37 = vadd.f32 %v709_v9, %v610_v48 }
 0x166   :  { %v670_v10 = vpop.f32.mrf.mxu0  ;;  %v711_v14 = vpop.f32.mrf.mxu1 }
 0x168   :  { %v671_v15 = vpop.f32.mrf.mxu0  ;;  %v712_v16 = vpop.f32.mrf.mxu1 }
 0x16a   :  { %v811_v17 = vpop.f32.mrf.mxu0  ;;  %v852_v18 = vpop.f32.mrf.mxu1 }
 0x16b   :  { %v859_v38 = vadd.f32 %v811_v17, %v714_v49  ;;  %v861_v46 = vadd.f32 %v852_v18, %v716_v44 }
 0x16c   :  { %v813_v8 = vpop.f32.mrf.mxu0  ;;  %v854_v19 = vpop.f32.mrf.mxu1 }
 0x16d   :  { %v860_v2 = vadd.f32 %v813_v8, %v715_v55  ;;  %v862_v51 = vadd.f32 %v854_v19, %v717_v37 }
 0x16e   :  { %v815_v20 = vpop.f32.mrf.mxu0  ;;  %v856_v21 = vpop.f32.mrf.mxu1 }
 0x170   :  { %v816_v22 = vpop.f32.mrf.mxu0  ;;  %v857_v23 = vpop.f32.mrf.mxu1 }
 0x172   :  { %v956_v24 = vpop.f32.mrf.mxu0  ;;  %v997_v25 = vpop.f32.mrf.mxu1 }
 0x173   :  { %v1004_v52 = vadd.f32 %v956_v24, %v859_v38  ;;  %v1006_v56 = vadd.f32 %v997_v25, %v861_v46 }
 0x174   :  { %v958_v26 = vpop.f32.mrf.mxu0  ;;  %v999_v13 = vpop.f32.mrf.mxu1 }
 0x175   :  { %v1005_v57 = vadd.f32 %v958_v26, %v860_v2  ;;  %v1007_v58 = vadd.f32 %v999_v13, %v862_v51 }
 0x176   :  { %v960_v12 = vpop.f32.mrf.mxu0  ;;  %v1001_v27 = vpop.f32.mrf.mxu1 }
 0x178   :  { %v961_v32 = vpop.f32.mrf.mxu0  ;;  %v1002_v7 = vpop.f32.mrf.mxu1 }
 0x17a   :  { %v1101_v41 = vpop.f32.mrf.mxu0  ;;  %v1142_v42 = vpop.f32.mrf.mxu1 }
 0x17b   :  { %v1149_v59 = vadd.f32 %v1101_v41, %v1004_v52  ;;  %v1151_v1 = vadd.f32 %v1142_v42, %v1006_v56 }
 0x17c   :  { %v1103_v50 = vpop.f32.mrf.mxu0  ;;  %v1144_v36 = vpop.f32.mrf.mxu1 }
 0x17d   :  { %v1150_v60 = vadd.f32 %v1103_v50, %v1005_v57  ;;  %v1152_v61 = vadd.f32 %v1144_v36, %v1007_v58 }
 0x17e   :  { %v1105_v39 = vpop.f32.mrf.mxu0  ;;  %v1146_v45 = vpop.f32.mrf.mxu1 }
 0x180   :  { %v1106_v53 = vpop.f32.mrf.mxu0  ;;  %v1147_v54 = vpop.f32.mrf.mxu1 }
 0x182   :  { %v1246_v4 = vpop.f32.mrf.mxu0  ;;  %v1287_v0 = vpop.f32.mrf.mxu1 }
 0x183   :  { %v1294_v62 = vadd.f32 %v1246_v4, %v1149_v59  ;;  %v1296_v5 = vadd.f32 %v1287_v0, %v1151_v1 }
 0x184   :  { %v1248_v3 = vpop.f32.mrf.mxu0  ;;  %v1289_v63 = vpop.f32.mrf.mxu1 }
 0x185   :  { %v1295_v6 = vadd.f32 %v1248_v3, %v1150_v60  ;;  %v1297_v9 = vadd.f32 %v1289_v63, %v1152_v61  ;;  %v1323_v10 = vmul.f32 %v1294_v62, %v1294_v62  ;;  %v1325_v21 = vmul.f32 %v1296_v5, %v1296_v5 }
 0x186   :  { %v1250_v14 = vpop.f32.mrf.mxu0  ;;  %v1291_v15 = vpop.f32.mrf.mxu1 }
 0x187   :  { %v1391_v16 = vpack.c.bf16 %v1295_v6, %v1294_v62  ;;  %v1316_v17 = vadd.f32 %v1295_v6, %v1294_v62  ;;  %v1324_v18 = vmul.f32 %v1295_v6, %v1295_v6  ;;  %v1392_v8 = vpack.c.bf16 %v1297_v9, %v1296_v5 }
 0x188   :  { %v1251_v19 = vpop.f32.mrf.mxu0  ;;  %v1292_v20 = vpop.f32.mrf.mxu1  ;;  %v1326_v25 = vmul.f32 %v1297_v9, %v1297_v9 }
 0x189   :  { %1314 = vst [vmem:[%s1765_s5] sm:$0xff] %v1391_v16  ;;  %1315 = vst [vmem:[%s1765_s5 + $0x8] sm:$0xff] %v1392_v8  ;;  %v1317_v22 = vadd.f32 %v1316_v17, %v1296_v5  ;;  %v1327_v23 = vadd.f32 %v1324_v18, %v1323_v10 }
 0x18b   :  { %v1318_v24 = vadd.f32 %v1317_v22, %v1297_v9  ;;  %v1328_v26 = vadd.f32 %v1327_v23, %v1325_v21 }
 0x18d   :  { %1319 = vadd.xlane.f32.xlu0 %v1318_v24  ;;  %v1329_v13 = vadd.f32 %v1328_v26, %v1326_v25 }
 0x18f   :  { %1330 = vadd.xlane.f32.xlu1 %v1329_v13 }
 0x216   :  { %v1320_v11 = vpop.xlane.xlu0 %1319 }
 0x217   :  { %1322 = vst.msk [vmem:[%s1766_s6] sm:$0xff] %vm1321_vm10, %v1320_v11 }
 0x218   :  { %v1331_v12 = vpop.xlane.xlu1 %1330 }
 0x219   :  { %1332 = vst.msk [vmem:[%s1767_s7] sm:$0xff] %vm1321_vm10, %v1331_v12 }

// kernel: basic_block_pallas.4
= control target key start
LH: loop header
LB: loop body
LE: loop exit
PB: predicated region body
PF: predicated region fallthrough
CT: control target
= control target key end

     0   :  { %v1429_v0 = vmov 0   ;;  %s1433_s9 = smov 1   ;;  %s1434_s10 = smov 127   ;;  %v70_v23 = vlaneseq  ;;  %vm155_vm2 = vcmask 1043456   ;;  %vm151_vm3 = vcmask 64512   ;;  %s1794_s3 = inlined_call_operand.vmem [shape: f32[8,1], index: 3, kind: input, shape index: {}]   ;;  %s1795_s4 = inlined_call_operand.vmem [shape: f32[8,1], index: 4, kind: input, shape index: {}]   ;;  %s1796_s0 = inlined_call_operand.vmem [shape: bf16[1,8,512], index: 0, kind: input, shape index: {}]   ;;  %s1797_s2 = inlined_call_operand.vmem [shape: f32[9,1,512], index: 2, kind: input, shape index: {}]   ;;  %s1798_s1 = inlined_call_operand.vmem [shape: bf16[9,8,8], index: 1, kind: input, shape index: {}]   ;;  %s1799_s5 = inlined_call_operand.vmem [shape: bf16[1,8,512], index: 5, kind: output, shape index: {0}]   ;;  %s1800_s6 = inlined_call_operand.vmem [shape: f32[1,8,1], index: 6, kind: output, shape index: {1}]   ;;  %s1801_s7 = inlined_call_operand.vmem [shape: f32[1,8,1], index: 7, kind: output, shape index: {2}]  }
   0x1   :  { %1428 = vset.pattern.permute.xlu0 %v1429_v0  ;;  %v30_v1 = vld [vmem:[%s1794_s3] sm:$0xff]  ;;  %200 = vmatprep.mubr.bf16.mxu0 %v1429_v0  ;;  %v25_v4 = vld [vmem:[%s1796_s0 + $0x8] sm:$0xff]  ;;  %s1430_s3 = smov 16   ;;  %s1435_s11 = smov 113   ;;  %vm1347_vm10 = vcmask 7168  }
   0x2   :  { %33 = vperm.xlu0 %1428, %v30_v1   ;;  %241 = vmatprep.mubr.bf16.mxu1 %v1429_v0  ;;  %v40_v2 = vld [vmem:[%s1795_s4] sm:$0xff]  ;;  %v29_v6 = vunpack.c.h.bf16 %v25_v4  ;;  %v28_v12 = vunpack.c.l.bf16 %v25_v4  ;;  %s1432_s4 = smov 15   ;;  %s1436_s12 = smov 112   ;;  %v79_v24 = vshrl.u32 %v70_v23, 7  ;;  %v1533_v25 = vand.u32 127, %v70_v23 }
   0x3   :  { %v24_v3 = vld [vmem:[%s1796_s0] sm:$0xff]  ;;  %s1431_s0 = smov 17   ;;  %s1437_s13 = smov 111   ;;  %v1572_v57 = vld [vmem:[%s1797_s2 + $0x8] sm:$0xf] }
   0x4   :  { %v26_v5 = vunpack.c.l.bf16 %v24_v3  ;;  %v27_v8 = vunpack.c.h.bf16 %v24_v3  ;;  %v1535_v26 = vsub.s32 0, %v79_v24  ;;  %v55_v27 = vld [vmem:[%s1797_s2 + $0x4] sm:$0xf]  ;;  %vm115_vm0 = vcmp.lt.s32.totalorder %v1533_v25, 16  ;;  %v54_v34 = vld [vmem:[%s1797_s2] sm:$0xf] }
   0x5   :  { %v1542_v29 = vsub.s32 1, %v79_v24  ;;  %v1549_v35 = vsub.s32 2, %v79_v24  ;;  %v1552_v37 = vsub.s32 3, %v79_v24  ;;  %vm72_vm1 = vcmp.lt.s32.totalorder %v1533_v25, 17  ;;  %v1371_v58 = vld [vmem:[%s1798_s1 + $0x4] sm:$0xf] }
   0x6   :  { %43 = vperm.xlu0 %1428, %v40_v2   ;;  %v124_v28 = vrot.slane %v55_v27, %v1535_v26  ;;  %v81_v41 = vrot.slane %v54_v34, %v1535_v26  ;;  %vm355_vm4 = vcmp.lt.s32.totalorder %v1533_v25, 15  ;;  %v364_v1 = vrot.slane %v1572_v57, %v1535_v26  ;;  %v102_v23 = vld [vmem:[%s1798_s1] sm:$0xf] }
   0x7   :  { %v128_v36 = vrot.slane %v55_v27, %v1542_v29  ;;  %v132_v42 = vrot.slane %v55_v27, %v1549_v35  ;;  %v136_v45 = vrot.slane %v55_v27, %v1552_v37  ;;  %v85_v52 = vrot.slane %v54_v34, %v1542_v29 }
   0x8   :  { %v89_v2 = vrot.slane %v54_v34, %v1549_v35  ;;  %vm500_vm5 = vcmp.lt.s32.totalorder %v1533_v25, 1  ;;  %vm752_vm6 = vcmp.lt.s32.totalorder %v1533_v25, 127  ;;  %vm897_vm7 = vcmp.lt.s32.totalorder %v1533_v25, 113 }
   0x9   :  { %vm1042_vm8 = vcmp.lt.s32.totalorder %v1533_v25, 112  ;;  %vm1187_vm9 = vcmp.lt.s32.totalorder %v1533_v25, 111 }
  0x7d   :  { %v34_v7 = vpop.permute.xlu0 %33 }
  0x7e   :  { %v36_v9 = vmul.f32 %v34_v7, %v26_v5  ;;  %v39_v10 = vmul.f32 %v34_v7, %v29_v6  ;;  %v37_v13 = vmul.f32 %v34_v7, %v27_v8  ;;  %v38_v19 = vmul.f32 %v34_v7, %v28_v12 }
  0x7f   :  { %v93_v6 = vrot.slane %v54_v34, %v1552_v37 }
  0x81   :  { %v44_v11 = vpop.permute.xlu0 %43 }
  0x82   :  { %v46_v14 = vadd.f32 %v44_v11, %v36_v9  ;;  %v49_v15 = vadd.f32 %v44_v11, %v39_v10  ;;  %v47_v16 = vadd.f32 %v44_v11, %v37_v13  ;;  %v48_v20 = vadd.f32 %v44_v11, %v38_v19 }
  0x83   :  { %v368_v13 = vrot.slane %v1572_v57, %v1542_v29 }
  0x84   :  { %v1493_v17 = vmax.f32 %v46_v14, 0.0  ;;  %v1495_v18 = vmax.f32 %v49_v15, 0.0  ;;  %v1499_v21 = vmax.f32 %v47_v16, 0.0  ;;  %v1503_v22 = vmax.f32 %v48_v20, 0.0  ;;  %v57_v20 = vld [vmem:[%s1797_s2 + $0xc] sm:$0xf] }
  0x86   :  { %113 = vrot.lane.b32.xlu0 %v1495_v18, %s1430_s3  ;;  %107 = vrot.lane.b32.xlu1 %v1493_v17, %s1430_s3 }
  0x8a   :  { %62 = vrot.lane.b32.xlu0 %v1493_v17, %s1431_s0  ;;  %109 = vrot.lane.b32.xlu1 %v1499_v21, %s1430_s3 }
  0x8e   :  { %68 = vrot.lane.b32.xlu0 %v1495_v18, %s1431_s0  ;;  %111 = vrot.lane.b32.xlu1 %v1503_v22, %s1430_s3 }
  0x92   :  { %347 = vrot.lane.b32.xlu0 %v1493_v17, %s1432_s4  ;;  %64 = vrot.lane.b32.xlu1 %v1499_v21, %s1431_s0 }
  0x96   :  { %353 = vrot.lane.b32.xlu0 %v1495_v18, %s1432_s4  ;;  %66 = vrot.lane.b32.xlu1 %v1503_v22, %s1431_s0 }
  0x9a   :  { %492 = vrot.lane.b32.xlu0 %v1493_v17, %s1433_s9  ;;  %349 = vrot.lane.b32.xlu1 %v1499_v21, %s1432_s4 }
  0x9e   :  { %498 = vrot.lane.b32.xlu0 %v1495_v18, %s1433_s9  ;;  %351 = vrot.lane.b32.xlu1 %v1503_v22, %s1432_s4 }
  0xa2   :  { %744 = vrot.lane.b32.xlu0 %v1493_v17, %s1434_s10  ;;  %494 = vrot.lane.b32.xlu1 %v1499_v21, %s1433_s9 }
  0xa6   :  { %748 = vrot.lane.b32.xlu0 %v1503_v22, %s1434_s10  ;;  %496 = vrot.lane.b32.xlu1 %v1503_v22, %s1433_s9 }
  0xaa   :  { %889 = vrot.lane.b32.xlu0 %v1493_v17, %s1435_s11  ;;  %746 = vrot.lane.b32.xlu1 %v1499_v21, %s1434_s10 }
  0xae   :  { %893 = vrot.lane.b32.xlu0 %v1503_v22, %s1435_s11  ;;  %750 = vrot.lane.b32.xlu1 %v1495_v18, %s1434_s10 }
  0xb2   :  { %1034 = vrot.lane.b32.xlu0 %v1493_v17, %s1436_s12  ;;  %891 = vrot.lane.b32.xlu1 %v1499_v21, %s1435_s11 }
  0xb6   :  { %1038 = vrot.lane.b32.xlu0 %v1503_v22, %s1436_s12  ;;  %895 = vrot.lane.b32.xlu1 %v1495_v18, %s1435_s11 }
  0xba   :  { %1179 = vrot.lane.b32.xlu0 %v1493_v17, %s1437_s13  ;;  %1036 = vrot.lane.b32.xlu1 %v1499_v21, %s1436_s12 }
  0xbe   :  { %1183 = vrot.lane.b32.xlu0 %v1503_v22, %s1437_s13  ;;  %1040 = vrot.lane.b32.xlu1 %v1495_v18, %s1436_s12 }
  0xc2   :  { %1181 = vrot.lane.b32.xlu1 %v1499_v21, %s1437_s13 }
  0xc6   :  { %1185 = vrot.lane.b32.xlu1 %v1495_v18, %s1437_s13 }
  0xf8   :  { %v114_v30 = vpop.permute.xlu0 %113  ;;  %v108_v31 = vpop.permute.xlu1 %107 }
  0xf9   :  { %v119_v32 = vsel %vm115_vm0, %v114_v30, %v108_v31 }
  0xfa   :  { %v141_v33 = vmul.f32 %v124_v28, %v119_v32  ;;  %v509_v32 = vrot.slane %v57_v20, %v1535_v26 }
  0xfc   :  { %v63_v38 = vpop.permute.xlu0 %62  ;;  %v110_v39 = vpop.permute.xlu1 %109  ;;  %v147_v44 = vpack.c.bf16 %v141_v33, %v141_v33  ;;  %v372_v33 = vrot.slane %v1572_v57, %v1549_v35 }
  0xfd   :  { %v118_v40 = vsel %vm115_vm0, %v108_v31, %v110_v39 }
  0xfe   :  { %v142_v43 = vmul.f32 %v128_v36, %v118_v40  ;;  %v157_v55 = vsel %vm155_vm2, %v147_v44, 0 }
 0x100   :  { %v69_v46 = vpop.permute.xlu0 %68  ;;  %v112_v47 = vpop.permute.xlu1 %111  ;;  %v148_v48 = vpack.c.bf16 %v142_v43, %v142_v43 }
 0x101   :  { %v76_v49 = vsel %vm72_vm1, %v69_v46, %v63_v38  ;;  %v116_v50 = vsel %vm115_vm0, %v112_v47, %v114_v30  ;;  %v117_v51 = vsel %vm115_vm0, %v110_v39, %v112_v47  ;;  %v376_v39 = vrot.slane %v1572_v57, %v1552_v37 }
 0x102   :  { %v98_v53 = vmul.f32 %v81_v41, %v76_v49  ;;  %v143_v54 = vmul.f32 %v132_v42, %v117_v51  ;;  %1372 = vmatprep.subr.msk.bf16.mxu0 %vm155_vm2, %v148_v48  ;;  %v144_v56 = vmul.f32 %v136_v45, %v116_v50  ;;  %v1380_v51 = vld [vmem:[%s1798_s1 + $0x8] sm:$0xf]  ;;  %v517_v57 = vrot.slane %v57_v20, %v1549_v35 }
 0x103   :  { %183 = vmatpush1.bf16.msra.mxu0 %v157_v55 }
 0x104   :  { %v348_v59 = vpop.permute.xlu0 %347  ;;  %v65_v60 = vpop.permute.xlu1 %64  ;;  %v150_v61 = vpack.c.bf16 %v144_v56, %v144_v56  ;;  %v149_v62 = vpack.c.bf16 %v143_v54, %v143_v54  ;;  %v103_v3 = vpack.c.bf16 %v98_v53, %v98_v53 }
 0x105   :  { %v75_v63 = vsel %vm72_vm1, %v63_v38, %v65_v60 }
 0x106   :  { %v99_v4 = vmul.f32 %v85_v52, %v75_v63  ;;  %1373 = vmatmul.mubr.msk.bf16.vlgmr.msra.gmra.mxu0 %vm151_vm3, %v1371_v58  ;;  %1374 = vmatprep.subr.msk.bf16.mxu1 %vm155_vm2, %v150_v61  ;;  %v163_v5 = vsel %vm155_vm2, %v149_v62, 0  ;;  %v254_v19 = vsel %vm155_vm2, %v103_v3, 0  ;;  %v521_v61 = vrot.slane %v57_v20, %v1552_v37  ;;  %v58_v62 = vld [vmem:[%s1797_s2 + $0x14] sm:$0xf] }
 0x107   :  { %224 = vmatpush1.bf16.msra.mxu1 %v163_v5  ;;  %297 = vmatprep.mubr.bf16.mxu0 %v1429_v0  ;;  %v640_v3 = vpack.c.bf16 %v1499_v21, %v1499_v21 }
 0x108   :  { %v104_v7 = vpack.c.bf16 %v99_v4, %v99_v4  ;;  %v354_v8 = vpop.permute.xlu0 %353  ;;  %v67_v9 = vpop.permute.xlu1 %66  ;;  %v639_v4 = vpack.c.bf16 %v1493_v17, %v1493_v17  ;;  %v765_v17 = vrot.slane %v58_v62, %v1542_v29 }
 0x109   :  { %v359_v10 = vsel %vm355_vm4, %v354_v8, %v348_v59  ;;  %v73_v11 = vsel %vm72_vm1, %v67_v9, %v69_v46  ;;  %v74_v12 = vsel %vm72_vm1, %v65_v60, %v67_v9  ;;  %v513_v46 = vrot.slane %v57_v20, %v1542_v29 }
 0x10a   :  { %v381_v14 = vmul.f32 %v364_v1, %v359_v10  ;;  %v100_v15 = vmul.f32 %v89_v2, %v74_v12  ;;  %v101_v16 = vmul.f32 %v93_v6, %v73_v11  ;;  %1375 = vmatmul.mubr.msk.bf16.vlgmr.msra.gmra.mxu1 %vm151_vm3, %v1371_v58  ;;  %1376 = vmatprep.subr.msk.bf16.mxu0 %vm155_vm2, %v104_v7  ;;  %v1385_v10 = vld [vmem:[%s1798_s1 + $0xc] sm:$0xf] }
 0x10b   :  { %280 = vmatpush1.bf16.msra.mxu0 %v254_v19  ;;  %338 = vmatprep.mubr.bf16.mxu1 %v1429_v0  ;;  %v761_v7 = vrot.slane %v58_v62, %v1535_v26 }
 0x10c   :  { %v105_v24 = vpack.c.bf16 %v100_v15, %v100_v15  ;;  %v106_v27 = vpack.c.bf16 %v101_v16, %v101_v16  ;;  %v493_v28 = vpop.permute.xlu0 %492  ;;  %v350_v30 = vpop.permute.xlu1 %349  ;;  %v387_v34 = vpack.c.bf16 %v381_v14, %v381_v14  ;;  %v642_v15 = vpack.c.bf16 %v1495_v18, %v1495_v18 }
 0x10d   :  { %v358_v31 = vsel %vm355_vm4, %v348_v59, %v350_v30  ;;  %v641_v16 = vpack.c.bf16 %v1503_v22, %v1503_v22  ;;  %v773_v22 = vrot.slane %v58_v62, %v1552_v37 }
 0x10e   :  { %v382_v36 = vmul.f32 %v368_v13, %v358_v31  ;;  %1377 = vmatmul.mubr.msk.bf16.vlgmr.msra.gmra.mxu0 %vm151_vm3, %v102_v23  ;;  %1378 = vmatprep.subr.msk.bf16.mxu1 %vm155_vm2, %v106_v27  ;;  %v260_v38 = vsel %vm155_vm2, %v105_v24, 0  ;;  %v395_v50 = vsel %vm155_vm2, %v387_v34, 0  ;;  %v769_v24 = vrot.slane %v58_v62, %v1549_v35 }
 0x10f   :  { %321 = vmatpush1.bf16.msra.mxu1 %v260_v38  ;;  %438 = vmatprep.mubr.bf16.mxu0 %v1429_v0  ;;  %v653_v34 = vsel %vm155_vm2, %v641_v16, 0 }
 0x110   :  { %v388_v40 = vpack.c.bf16 %v382_v36, %v382_v36  ;;  %v499_v41 = vpop.permute.xlu0 %498  ;;  %v352_v42 = vpop.permute.xlu1 %351 }
 0x111   :  { %v504_v43 = vsel %vm500_vm5, %v499_v41, %v493_v28  ;;  %v356_v44 = vsel %vm355_vm4, %v352_v42, %v354_v8  ;;  %v357_v45 = vsel %vm355_vm4, %v350_v30, %v352_v42  ;;  %v59_v30 = vld [vmem:[%s1797_s2 + $0x18] sm:$0xf] }
 0x112   :  { %v526_v47 = vmul.f32 %v509_v32, %v504_v43  ;;  %v383_v48 = vmul.f32 %v372_v33, %v357_v45  ;;  %v384_v49 = vmul.f32 %v376_v39, %v356_v44  ;;  %1379 = vmatmul.mubr.msk.bf16.vlgmr.msra.gmra.mxu1 %vm151_vm3, %v102_v23  ;;  %1381 = vmatprep.subr.msk.bf16.mxu0 %vm155_vm2, %v388_v40  ;;  %v647_v23 = vsel %vm155_vm2, %v639_v4, 0  ;;  %v1390_v44 = vld [vmem:[%s1798_s1 + $0x10] sm:$0xf] }
 0x113   :  { %421 = vmatpush1.bf16.msra.mxu0 %v395_v50  ;;  %479 = vmatprep.mubr.bf16.mxu1 %v1429_v0  ;;  %v906_v39 = vrot.slane %v59_v30, %v1535_v26  ;;  %v910_v40 = vrot.slane %v59_v30, %v1542_v29  ;;  %v914_v50 = vrot.slane %v59_v30, %v1549_v35 }
 0x114   :  { %v389_v52 = vpack.c.bf16 %v383_v48, %v383_v48  ;;  %v390_v53 = vpack.c.bf16 %v384_v49, %v384_v49  ;;  %v745_v54 = vpop.permute.xlu0 %744  ;;  %v495_v55 = vpop.permute.xlu1 %494  ;;  %v532_v58 = vpack.c.bf16 %v526_v47, %v526_v47 }
 0x115   :  { %v503_v56 = vsel %vm500_vm5, %v493_v28, %v495_v55 }
 0x116   :  { %v527_v59 = vmul.f32 %v513_v46, %v503_v56  ;;  %1382 = vmatmul.mubr.msk.bf16.vlgmr.msra.gmra.mxu0 %vm151_vm3, %v1380_v51  ;;  %1383 = vmatprep.subr.msk.bf16.mxu1 %vm155_vm2, %v390_v53  ;;  %v401_v60 = vsel %vm155_vm2, %v389_v52, 0  ;;  %v540_v21 = vsel %vm155_vm2, %v532_v58, 0  ;;  %v60_v56 = vld [vmem:[%s1797_s2 + $0x1c] sm:$0xf] }
 0x117   :  { %462 = vmatpush1.bf16.msra.mxu1 %v401_v60  ;;  %583 = vmatprep.mubr.bf16.mxu0 %v1429_v0  ;;  %v1051_v62 = vrot.slane %v60_v56, %v1535_v26 }
 0x118   :  { %v533_v63 = vpack.c.bf16 %v527_v59, %v527_v59  ;;  %v749_v1 = vpop.permute.xlu0 %748  ;;  %v497_v2 = vpop.permute.xlu1 %496 }
 0x119   :  { %v501_v5 = vsel %vm500_vm5, %v497_v2, %v499_v41  ;;  %v502_v6 = vsel %vm500_vm5, %v495_v55, %v497_v2 }
 0x11a   :  { %v528_v8 = vmul.f32 %v517_v57, %v502_v6  ;;  %v529_v9 = vmul.f32 %v521_v61, %v501_v5  ;;  %1384 = vmatmul.mubr.msk.bf16.vlgmr.msra.gmra.mxu1 %vm151_vm3, %v1380_v51  ;;  %1386 = vmatprep.subr.msk.bf16.mxu0 %vm155_vm2, %v533_v63  ;;  %v918_v51 = vrot.slane %v59_v30, %v1552_v37  ;;  %v1395_v5 = vld [vmem:[%s1798_s1 + $0x14] sm:$0xf] }
 0x11b   :  { %566 = vmatpush1.bf16.msra.mxu0 %v540_v21  ;;  %624 = vmatprep.mubr.bf16.mxu1 %v1429_v0  ;;  %v1055_v63 = vrot.slane %v60_v56, %v1542_v29  ;;  %v1059_v21 = vrot.slane %v60_v56, %v1549_v35 }
 0x11c   :  { %v534_v11 = vpack.c.bf16 %v528_v8, %v528_v8  ;;  %v535_v12 = vpack.c.bf16 %v529_v9, %v529_v9  ;;  %v890_v13 = vpop.permute.xlu0 %889  ;;  %1391 = vmatprep.subr.msk.bf16.mxu0 %vm155_vm2, %v640_v3  ;;  %v747_v14 = vpop.permute.xlu1 %746 }
 0x11d   :  { %v754_v19 = vsel %vm752_vm6, %v747_v14, %v749_v1  ;;  %v755_v20 = vsel %vm752_vm6, %v745_v54, %v747_v14 }
 0x11e   :  { %v778_v27 = vmul.f32 %v761_v7, %v755_v20  ;;  %v779_v28 = vmul.f32 %v765_v17, %v754_v19  ;;  %1387 = vmatmul.mubr.msk.bf16.vlgmr.msra.gmra.mxu0 %vm151_vm3, %v1385_v10  ;;  %1388 = vmatprep.subr.msk.bf16.mxu1 %vm155_vm2, %v535_v12  ;;  %v546_v18 = vsel %vm155_vm2, %v534_v11, 0  ;;  %v1063_v17 = vrot.slane %v60_v56, %v1552_v37 }
 0x11f   :  { %607 = vmatpush1.bf16.msra.mxu1 %v546_v18  ;;  %673 = vmatpush1.bf16.msra.mxu0 %v647_v23 }
 0x120   :  { %v785_v31 = vpack.c.bf16 %v779_v28, %v779_v28  ;;  %v894_v32 = vpop.permute.xlu0 %893  ;;  %1393 = vmatprep.subr.msk.bf16.mxu1 %vm155_vm2, %v642_v15  ;;  %v751_v33 = vpop.permute.xlu1 %750  ;;  %690 = vmatprep.mubr.bf16.mxu0 %v1429_v0  ;;  %v784_v41 = vpack.c.bf16 %v778_v27, %v778_v27  ;;  %v61_v15 = vld [vmem:[%s1797_s2 + $0x20] sm:$0xf] }
 0x121   :  { %v753_v36 = vsel %vm752_vm6, %v749_v1, %v751_v33  ;;  %v756_v38 = vsel %vm752_vm6, %v751_v33, %v745_v54  ;;  %v1200_v27 = vrot.slane %v61_v15, %v1542_v29 }
 0x122   :  { %v780_v42 = vmul.f32 %v769_v24, %v753_v36  ;;  %v781_v43 = vmul.f32 %v773_v22, %v756_v38  ;;  %1389 = vmatmul.mubr.msk.bf16.vlgmr.msra.gmra.mxu1 %vm151_vm3, %v1385_v10  ;;  %1396 = vmatprep.subr.msk.bf16.mxu0 %vm155_vm2, %v785_v31  ;;  %v792_v55 = vsel %vm155_vm2, %v784_v41, 0  ;;  %v1196_v24 = vrot.slane %v61_v15, %v1535_v26  ;;  %v1400_v31 = vld [vmem:[%s1798_s1 + $0x18] sm:$0xf] }
 0x123   :  { %714 = vmatpush1.bf16.msra.mxu1 %v653_v34  ;;  %731 = vmatprep.mubr.bf16.mxu1 %v1429_v0  ;;  %v1204_v36 = vrot.slane %v61_v15, %v1549_v35  ;;  %v1208_v38 = vrot.slane %v61_v15, %v1552_v37 }
 0x124   :  { %v787_v45 = vpack.c.bf16 %v781_v43, %v781_v43  ;;  %v1035_v46 = vpop.permute.xlu0 %1034  ;;  %v892_v47 = vpop.permute.xlu1 %891  ;;  %v786_v52 = vpack.c.bf16 %v780_v42, %v780_v42 }
 0x125   :  { %v899_v48 = vsel %vm897_vm7, %v892_v47, %v894_v32  ;;  %v900_v49 = vsel %vm897_vm7, %v890_v13, %v892_v47 }
 0x126   :  { %v923_v53 = vmul.f32 %v906_v39, %v900_v49  ;;  %v924_v54 = vmul.f32 %v910_v40, %v899_v48  ;;  %1392 = vmatmul.mubr.msk.bf16.vlgmr.msra.gmra.mxu0 %vm151_vm3, %v1390_v44  ;;  %1398 = vmatprep.subr.msk.bf16.mxu1 %vm155_vm2, %v787_v45  ;;  %v798_v4 = vsel %vm155_vm2, %v786_v52, 0  ;;  %v1405_v49 = vld [vmem:[%s1798_s1 + $0x1c] sm:$0xf] }
 0x127   :  { %818 = vmatpush1.bf16.msra.mxu0 %v792_v55  ;;  %835 = vmatprep.mubr.bf16.mxu0 %v1429_v0 }
 0x128   :  { %v930_v57 = vpack.c.bf16 %v924_v54, %v924_v54  ;;  %v1039_v58 = vpop.permute.xlu0 %1038  ;;  %v896_v59 = vpop.permute.xlu1 %895  ;;  %v929_v1 = vpack.c.bf16 %v923_v53, %v923_v53  ;;  %v1410_v53 = vld [vmem:[%s1798_s1 + $0x20] sm:$0xf] }
 0x129   :  { %v898_v60 = vsel %vm897_vm7, %v894_v32, %v896_v59  ;;  %v901_v61 = vsel %vm897_vm7, %v896_v59, %v890_v13 }
 0x12a   :  { %v925_v2 = vmul.f32 %v914_v50, %v898_v60  ;;  %v926_v3 = vmul.f32 %v918_v51, %v901_v61  ;;  %1394 = vmatmul.mubr.msk.bf16.vlgmr.msra.gmra.mxu1 %vm151_vm3, %v1390_v44  ;;  %1401 = vmatprep.subr.msk.bf16.mxu0 %vm155_vm2, %v930_v57  ;;  %v937_v14 = vsel %vm155_vm2, %v929_v1, 0 }
 0x12b   :  { %859 = vmatpush1.bf16.msra.mxu1 %v798_v4  ;;  %876 = vmatprep.mubr.bf16.mxu1 %v1429_v0 }
 0x12c   :  { %v932_v6 = vpack.c.bf16 %v926_v3, %v926_v3  ;;  %v1037_v7 = vpop.permute.xlu1 %1036  ;;  %v931_v10 = vpack.c.bf16 %v925_v2, %v925_v2  ;;  %v1180_v11 = vpop.permute.xlu0 %1179 }
 0x12d   :  { %v1044_v8 = vsel %vm1042_vm8, %v1037_v7, %v1039_v58  ;;  %v1045_v9 = vsel %vm1042_vm8, %v1035_v46, %v1037_v7 }
 0x12e   :  { %v1068_v12 = vmul.f32 %v1051_v62, %v1045_v9  ;;  %v1069_v13 = vmul.f32 %v1055_v63, %v1044_v8  ;;  %1397 = vmatmul.mubr.msk.bf16.vlgmr.msra.gmra.mxu0 %vm151_vm3, %v1395_v5  ;;  %1403 = vmatprep.subr.msk.bf16.mxu1 %vm155_vm2, %v932_v6  ;;  %v943_v30 = vsel %vm155_vm2, %v931_v10, 0 }
 0x12f   :  { %963 = vmatpush1.bf16.msra.mxu0 %v937_v14  ;;  %980 = vmatprep.mubr.bf16.mxu0 %v1429_v0 }
 0x130   :  { %v1075_v16 = vpack.c.bf16 %v1069_v13, %v1069_v13  ;;  %v1041_v19 = vpop.permute.xlu1 %1040  ;;  %v1074_v28 = vpack.c.bf16 %v1068_v12, %v1068_v12  ;;  %v1184_v32 = vpop.permute.xlu0 %1183 }
 0x131   :  { %v1043_v20 = vsel %vm1042_vm8, %v1039_v58, %v1041_v19  ;;  %v1046_v23 = vsel %vm1042_vm8, %v1041_v19, %v1035_v46 }
 0x132   :  { %v1070_v18 = vmul.f32 %v1059_v21, %v1043_v20  ;;  %v1071_v22 = vmul.f32 %v1063_v17, %v1046_v23  ;;  %1399 = vmatmul.mubr.msk.bf16.vlgmr.msra.gmra.mxu1 %vm151_vm3, %v1395_v5  ;;  %1406 = vmatprep.subr.msk.bf16.mxu0 %vm155_vm2, %v1075_v16  ;;  %v1082_v42 = vsel %vm155_vm2, %v1074_v28, 0 }
 0x133   :  { %1004 = vmatpush1.bf16.msra.mxu1 %v943_v30  ;;  %1021 = vmatprep.mubr.bf16.mxu1 %v1429_v0 }
 0x134   :  { %v1077_v26 = vpack.c.bf16 %v1071_v22, %v1071_v22  ;;  %v1182_v33 = vpop.permute.xlu1 %1181  ;;  %v1076_v39 = vpack.c.bf16 %v1070_v18, %v1070_v18 }
 0x135   :  { %v1189_v29 = vsel %vm1187_vm9, %v1182_v33, %v1184_v32  ;;  %v1190_v34 = vsel %vm1187_vm9, %v1180_v11, %v1182_v33 }
 0x136   :  { %v1213_v40 = vmul.f32 %v1196_v24, %v1190_v34  ;;  %v1214_v41 = vmul.f32 %v1200_v27, %v1189_v29  ;;  %1402 = vmatmul.mubr.msk.bf16.vlgmr.msra.gmra.mxu0 %vm151_vm3, %v1400_v31  ;;  %1408 = vmatprep.subr.msk.bf16.mxu1 %vm155_vm2, %v1077_v26  ;;  %v1088_v48 = vsel %vm155_vm2, %v1076_v39, 0 }
 0x137   :  { %1108 = vmatpush1.bf16.msra.mxu0 %v1082_v42  ;;  %1125 = vmatprep.mubr.bf16.mxu0 %v1429_v0 }
 0x138   :  { %v1220_v43 = vpack.c.bf16 %v1214_v41, %v1214_v41  ;;  %v1186_v44 = vpop.permute.xlu1 %1185  ;;  %v1219_v37 = vpack.c.bf16 %v1213_v40, %v1213_v40 }
 0x139   :  { %v1188_v45 = vsel %vm1187_vm9, %v1184_v32, %v1186_v44  ;;  %v1191_v35 = vsel %vm1187_vm9, %v1186_v44, %v1180_v11 }
 0x13a   :  { %v1215_v46 = vmul.f32 %v1204_v36, %v1188_v45  ;;  %v1216_v47 = vmul.f32 %v1208_v38, %v1191_v35  ;;  %1404 = vmatmul.mubr.msk.bf16.vlgmr.msra.gmra.mxu1 %vm151_vm3, %v1400_v31  ;;  %1411 = vmatprep.subr.msk.bf16.mxu0 %vm155_vm2, %v1220_v43  ;;  %v1227_v25 = vsel %vm155_vm2, %v1219_v37, 0 }
 0x13b   :  { %1149 = vmatpush1.bf16.msra.mxu1 %v1088_v48  ;;  %1166 = vmatprep.mubr.bf16.mxu1 %v1429_v0 }
 0x13c   :  { %v1222_v50 = vpack.c.bf16 %v1216_v47, %v1216_v47  ;;  %v1221_v51 = vpack.c.bf16 %v1215_v46, %v1215_v46 }
 0x13e   :  { %1407 = vmatmul.mubr.msk.bf16.vlgmr.msra.gmra.mxu0 %vm151_vm3, %v1405_v49  ;;  %1413 = vmatprep.subr.msk.bf16.mxu1 %vm155_vm2, %v1222_v50  ;;  %v1233_v52 = vsel %vm155_vm2, %v1221_v51, 0 }
 0x13f   :  { %1253 = vmatpush1.bf16.msra.mxu0 %v1227_v25  ;;  %1270 = vmatprep.mubr.bf16.mxu0 %v1429_v0 }
 0x142   :  { %1409 = vmatmul.mubr.msk.bf16.vlgmr.msra.gmra.mxu1 %vm151_vm3, %v1405_v49 }
 0x143   :  { %1294 = vmatpush1.bf16.msra.mxu1 %v1233_v52  ;;  %1311 = vmatprep.mubr.bf16.mxu1 %v1429_v0 }
 0x146   :  { %1412 = vmatmul.mubr.msk.bf16.vlgmr.msra.gmra.mxu0 %vm151_vm3, %v1410_v53 }
 0x14a   :  { %1414 = vmatmul.mubr.msk.bf16.vlgmr.msra.gmra.mxu1 %vm151_vm3, %v1410_v53 }
 0x1c6   :  { %v202_v54 = vpop.f32.mrf.mxu0 }
 0x1c8   :  { %v204_v55 = vpop.f32.mrf.mxu0 }
 0x1ca   :  { %v206_v56 = vpop.f32.mrf.mxu0  ;;  %v243_v57 = vpop.f32.mrf.mxu1 }
 0x1cc   :  { %v207_v58 = vpop.f32.mrf.mxu0  ;;  %v245_v59 = vpop.f32.mrf.mxu1 }
 0x1ce   :  { %v247_v60 = vpop.f32.mrf.mxu1  ;;  %v299_v61 = vpop.f32.mrf.mxu0 }
 0x1cf   :  { %v300_v43 = vadd.f32 %v299_v61, %v202_v54 }
 0x1d0   :  { %v248_v62 = vpop.f32.mrf.mxu1  ;;  %v301_v63 = vpop.f32.mrf.mxu0 }
 0x1d1   :  { %v302_v35 = vadd.f32 %v301_v63, %v204_v55 }
 0x1d2   :  { %v303_v1 = vpop.f32.mrf.mxu0  ;;  %v340_v2 = vpop.f32.mrf.mxu1 }
 0x1d3   :  { %v341_v48 = vadd.f32 %v340_v2, %v243_v57 }
 0x1d4   :  { %v304_v3 = vpop.f32.mrf.mxu0  ;;  %v342_v4 = vpop.f32.mrf.mxu1 }
 0x1d5   :  { %v343_v51 = vadd.f32 %v342_v4, %v245_v59 }
 0x1d6   :  { %v344_v5 = vpop.f32.mrf.mxu1  ;;  %v440_v0 = vpop.f32.mrf.mxu0 }
 0x1d7   :  { %v488_v37 = vadd.f32 %v440_v0, %v300_v43 }
 0x1d8   :  { %v345_v6 = vpop.f32.mrf.mxu1  ;;  %v442_v7 = vpop.f32.mrf.mxu0 }
 0x1d9   :  { %v489_v49 = vadd.f32 %v442_v7, %v302_v35 }
 0x1da   :  { %v444_v8 = vpop.f32.mrf.mxu0  ;;  %v481_v9 = vpop.f32.mrf.mxu1 }
 0x1db   :  { %v490_v53 = vadd.f32 %v481_v9, %v341_v48 }
 0x1dc   :  { %v445_v21 = vpop.f32.mrf.mxu0  ;;  %v483_v17 = vpop.f32.mrf.mxu1 }
 0x1dd   :  { %v491_v60 = vadd.f32 %v483_v17, %v343_v51 }
 0x1de   :  { %v485_v10 = vpop.f32.mrf.mxu1  ;;  %v585_v11 = vpop.f32.mrf.mxu0 }
 0x1df   :  { %v633_v50 = vadd.f32 %v585_v11, %v488_v37 }
 0x1e0   :  { %v486_v12 = vpop.f32.mrf.mxu1  ;;  %v587_v13 = vpop.f32.mrf.mxu0 }
 0x1e1   :  { %v634_v56 = vadd.f32 %v587_v13, %v489_v49 }
 0x1e2   :  { %v589_v14 = vpop.f32.mrf.mxu0  ;;  %v626_v15 = vpop.f32.mrf.mxu1 }
 0x1e3   :  { %v635_v3 = vadd.f32 %v626_v15, %v490_v53 }
 0x1e4   :  { %v590_v16 = vpop.f32.mrf.mxu0  ;;  %v628_v19 = vpop.f32.mrf.mxu1 }
 0x1e5   :  { %v636_v5 = vadd.f32 %v628_v19, %v491_v60 }
 0x1e6   :  { %v630_v20 = vpop.f32.mrf.mxu1  ;;  %v692_v23 = vpop.f32.mrf.mxu0 }
 0x1e7   :  { %v740_v58 = vadd.f32 %v692_v23, %v633_v50 }
 0x1e8   :  { %v631_v24 = vpop.f32.mrf.mxu1  ;;  %v694_v27 = vpop.f32.mrf.mxu0 }
 0x1e9   :  { %v741_v54 = vadd.f32 %v694_v27, %v634_v56 }
 0x1ea   :  { %v696_v28 = vpop.f32.mrf.mxu0  ;;  %v733_v18 = vpop.f32.mrf.mxu1 }
 0x1eb   :  { %v742_v0 = vadd.f32 %v733_v18, %v635_v3 }
 0x1ec   :  { %v697_v22 = vpop.f32.mrf.mxu0  ;;  %v735_v30 = vpop.f32.mrf.mxu1 }
 0x1ed   :  { %v743_v2 = vadd.f32 %v735_v30, %v636_v5 }
 0x1ee   :  { %v737_v31 = vpop.f32.mrf.mxu1  ;;  %v837_v32 = vpop.f32.mrf.mxu0 }
 0x1ef   :  { %v885_v61 = vadd.f32 %v837_v32, %v740_v58 }
 0x1f0   :  { %v738_v26 = vpop.f32.mrf.mxu1  ;;  %v839_v33 = vpop.f32.mrf.mxu0 }
 0x1f1   :  { %v886_v6 = vadd.f32 %v839_v33, %v741_v54 }
 0x1f2   :  { %v841_v29 = vpop.f32.mrf.mxu0  ;;  %v878_v34 = vpop.f32.mrf.mxu1 }
 0x1f3   :  { %v887_v4 = vadd.f32 %v878_v34, %v742_v0 }
 0x1f4   :  { %v842_v36 = vpop.f32.mrf.mxu0  ;;  %v880_v38 = vpop.f32.mrf.mxu1 }
 0x1f5   :  { %v888_v21 = vadd.f32 %v880_v38, %v743_v2 }
 0x1f6   :  { %v882_v39 = vpop.f32.mrf.mxu1  ;;  %v982_v40 = vpop.f32.mrf.mxu0 }
 0x1f7   :  { %v1030_v57 = vadd.f32 %v982_v40, %v885_v61 }
 0x1f8   :  { %v883_v41 = vpop.f32.mrf.mxu1  ;;  %v984_v42 = vpop.f32.mrf.mxu0 }
 0x1f9   :  { %v1031_v8 = vadd.f32 %v984_v42, %v886_v6 }
 0x1fa   :  { %v986_v44 = vpop.f32.mrf.mxu0  ;;  %v1023_v45 = vpop.f32.mrf.mxu1 }
 0x1fb   :  { %v1032_v11 = vadd.f32 %v1023_v45, %v887_v4 }
 0x1fc   :  { %v987_v46 = vpop.f32.mrf.mxu0  ;;  %v1025_v47 = vpop.f32.mrf.mxu1 }
 0x1fd   :  { %v1033_v14 = vadd.f32 %v1025_v47, %v888_v21 }
 0x1fe   :  { %v1027_v25 = vpop.f32.mrf.mxu1  ;;  %v1127_v52 = vpop.f32.mrf.mxu0 }
 0x1ff   :  { %v1175_v9 = vadd.f32 %v1127_v52, %v1030_v57 }
 0x200   :  { %v1028_v62 = vpop.f32.mrf.mxu1  ;;  %v1129_v1 = vpop.f32.mrf.mxu0 }
 0x201   :  { %v1176_v12 = vadd.f32 %v1129_v1, %v1031_v8 }
 0x202   :  { %v1131_v55 = vpop.f32.mrf.mxu0  ;;  %v1168_v63 = vpop.f32.mrf.mxu1 }
 0x203   :  { %v1177_v19 = vadd.f32 %v1168_v63, %v1032_v11 }
 0x204   :  { %v1132_v7 = vpop.f32.mrf.mxu0  ;;  %v1170_v59 = vpop.f32.mrf.mxu1 }
 0x205   :  { %v1178_v23 = vadd.f32 %v1170_v59, %v1033_v14 }
 0x206   :  { %v1172_v10 = vpop.f32.mrf.mxu1  ;;  %v1272_v17 = vpop.f32.mrf.mxu0 }
 0x207   :  { %v1320_v13 = vadd.f32 %v1272_v17, %v1175_v9 }
 0x208   :  { %v1173_v15 = vpop.f32.mrf.mxu1  ;;  %v1274_v16 = vpop.f32.mrf.mxu0 }
 0x209   :  { %v1321_v20 = vadd.f32 %v1274_v16, %v1176_v12  ;;  %v1349_v24 = vmul.f32 %v1320_v13, %v1320_v13 }
 0x20a   :  { %v1276_v27 = vpop.f32.mrf.mxu0  ;;  %v1313_v28 = vpop.f32.mrf.mxu1 }
 0x20b   :  { %v1417_v18 = vpack.c.bf16 %v1321_v20, %v1320_v13  ;;  %v1342_v22 = vadd.f32 %v1321_v20, %v1320_v13  ;;  %v1350_v30 = vmul.f32 %v1321_v20, %v1321_v20  ;;  %v1322_v31 = vadd.f32 %v1313_v28, %v1177_v19 }
 0x20c   :  { %v1277_v32 = vpop.f32.mrf.mxu0  ;;  %v1315_v26 = vpop.f32.mrf.mxu1 }
 0x20d   :  { %1340 = vst [vmem:[%s1799_s5] sm:$0xff] %v1417_v18  ;;  %v1351_v33 = vmul.f32 %v1322_v31, %v1322_v31  ;;  %v1323_v29 = vadd.f32 %v1315_v26, %v1178_v23  ;;  %v1343_v34 = vadd.f32 %v1342_v22, %v1322_v31  ;;  %v1353_v36 = vadd.f32 %v1350_v30, %v1349_v24 }
 0x20e   :  { %v1317_v38 = vpop.f32.mrf.mxu1 }
 0x20f   :  { %v1418_v39 = vpack.c.bf16 %v1323_v29, %v1322_v31  ;;  %v1344_v40 = vadd.f32 %v1343_v34, %v1323_v29  ;;  %v1352_v41 = vmul.f32 %v1323_v29, %v1323_v29  ;;  %v1354_v42 = vadd.f32 %v1353_v36, %v1351_v33 }
 0x210   :  { %v1318_v43 = vpop.f32.mrf.mxu1 }
 0x211   :  { %1341 = vst [vmem:[%s1799_s5 + $0x8] sm:$0xff] %v1418_v39  ;;  %1345 = vadd.xlane.f32.xlu0 %v1344_v40  ;;  %v1355_v44 = vadd.f32 %v1354_v42, %v1352_v41 }
 0x213   :  { %1356 = vadd.xlane.f32.xlu1 %v1355_v44 }
 0x29a   :  { %v1346_v45 = vpop.xlane.xlu0 %1345 }
 0x29b   :  { %1348 = vst.msk [vmem:[%s1800_s6] sm:$0xff] %vm1347_vm10, %v1346_v45 }
 0x29c   :  { %v1357_v35 = vpop.xlane.xlu1 %1356 }
 0x29d   :  { %1358 = vst.msk [vmem:[%s1801_s7] sm:$0xff] %vm1347_vm10, %v1357_v35 }

</bundles_post_ra>
